<compile_context>
chip_gen: v5e
topology: v5e:2x2
jax: 0.10.0
libtpu: 0.0.40
codegen_flags: <defaults>
</compile_context>

<pallas_src>
import jax
import jax.numpy as jnp
from jax.experimental import pallas as pl
from jax.experimental.pallas import tpu as pltpu


# ---------------------------------------------------------------------------
# Kernel 1: 3x3 conv (s1, p1, no bias) for one image per grid step, done as a
# single im2col matmul, plus per-image per-channel sum / sum-of-squares so the
# BatchNorm batch reduction mostly happens in-kernel.
# ---------------------------------------------------------------------------
def _conv_im2col_kernel(x_ref, w_ref, y_ref, s_ref, ss_ref, xpad_ref):
    # x_ref   : (1, H, W, Cin)    unpadded NHWC tile (bf16)
    # w_ref   : (9*Cin, Cp)       weights, (dy,dx,cin) major->minor, Cout padded to Cp (bf16)
    # y_ref   : (1, Cout, H*W)    conv output, channel-first, lane-dense (f32)
    # s_ref   : (1, 1, Cout)      per-image per-channel sum of y
    # ss_ref  : (1, 1, Cout)      per-image per-channel sum of y^2
    # xpad_ref: (H+2, W+2, Cin)   f32 VMEM scratch holding the zero-padded tile
    H, W, Cin = x_ref.shape[1], x_ref.shape[2], x_ref.shape[3]
    Cout = y_ref.shape[1]
    HW = y_ref.shape[2]

    # In-kernel zero padding (pad=1).  Re-zeroed every grid step: scratch state
    # must not be assumed shared across a "parallel" grid axis (megacore).
    xpad_ref[...] = jnp.zeros_like(xpad_ref)
    xpad_ref[1:H + 1, 1:W + 1, :] = x_ref[0].astype(jnp.float32)

    # im2col patch matrix (H*W, 9*Cin); taps ordered (dy, dx) row-major, then
    # cin -- the weight reshape in the wrapper uses the same ordering.
    cols = []
    for dy in range(3):
        for dx in range(3):
            cols.append(xpad_ref[dy:dy + H, dx:dx + W, :].reshape(HW, Cin))
    patches = jnp.concatenate(cols, axis=1).astype(w_ref.dtype)   # (HW, 9*Cin) bf16

    # ONE MXU matmul: (H*W, 9*Cin) @ (9*Cin, Cp) -> f32 (H*W, Cp).
    acc = jnp.dot(patches, w_ref[...], preferred_element_type=jnp.float32)

    # Per-image BN partial sums in f32 (padded channels are exactly zero).
    s_ref[...] = jnp.sum(acc, axis=0, keepdims=True)[:, :Cout][None]
    ss_ref[...] = jnp.sum(acc * acc, axis=0, keepdims=True)[:, :Cout][None]

    # Transpose on the XLU so the HBM store is channel-first and lane-dense
    # (last dim = H*W >= 128); the wrapper then only needs a free contiguous
    # reshape back to NCHW, not a relayout pass.
    y_ref[...] = acc.T[:Cout, :][None].astype(y_ref.dtype)


# ---------------------------------------------------------------------------
# Kernel 2: fused BatchNorm (precomputed per-channel scale/shift) + ReLU,
# written in place over the conv output (input_output_aliases).
# ---------------------------------------------------------------------------
def _bn_relu_kernel(y_ref, scale_ref, shift_ref, o_ref):
    # y_ref / o_ref: (1, Cout, H*W)   scale/shift: (1, Cout, 1)
    o_ref[...] = jnp.maximum(
        y_ref[...] * scale_ref[...] + shift_ref[...], 0.0
    ).astype(o_ref.dtype)


def conv_block_forward(x_nchw, w_oihw, gamma, beta, eps=1e-5,
                       mxu_dtype=jnp.bfloat16):
    """ConvBlock.forward: conv3x3(s1,p1,no bias) -> BatchNorm2d (training-mode
    batch stats) -> ReLU.  NCHW in / NCHW out like the PyTorch module."""
    N, Cin, H, W = x_nchw.shape
    Cout, KH, KW = w_oihw.shape[0], w_oihw.shape[2], w_oihw.shape[3]
    assert (KH, KW) == (3, 3)
    HW = H * W
    Cp = ((Cout + 127) // 128) * 128        # pad MXU output dim to full lanes

    # Input glue: NCHW -> NHWC fused with the bf16 cast (one small XLA pass
    # over x; the jnp.pad pass and the output relayout pass are gone).
    x_nhwc = jnp.transpose(x_nchw, (0, 2, 3, 1)).astype(mxu_dtype)

    # Weights: OIHW -> (ky, kx, cin, cout) -> (9*Cin, Cout), zero-pad to Cp.
    w2 = jnp.transpose(w_oihw, (2, 3, 1, 0)).reshape(KH * KW * Cin, Cout)
    w2 = jnp.pad(w2, ((0, 0), (0, Cp - Cout))).astype(mxu_dtype)

    conv = pl.pallas_call(
        _conv_im2col_kernel,
        out_shape=(
            jax.ShapeDtypeStruct((N, Cout, HW), jnp.float32),
            jax.ShapeDtypeStruct((N, 1, Cout), jnp.float32),
            jax.ShapeDtypeStruct((N, 1, Cout), jnp.float32),
        ),
        grid_spec=pltpu.PrefetchScalarGridSpec(
            num_scalar_prefetch=0,
            grid=(N,),
            in_specs=[
                pl.BlockSpec((1, H, W, Cin), lambda n: (n, 0, 0, 0)),
                pl.BlockSpec((KH * KW * Cin, Cp), lambda n: (0, 0)),
            ],
            out_specs=(
                pl.BlockSpec((1, Cout, HW), lambda n: (n, 0, 0)),
                pl.BlockSpec((1, 1, Cout), lambda n: (n, 0, 0)),
                pl.BlockSpec((1, 1, Cout), lambda n: (n, 0, 0)),
            ),
            scratch_shapes=[pltpu.VMEM((H + 2, W + 2, Cin), jnp.float32)],
        ),
        compiler_params=pltpu.CompilerParams(
            dimension_semantics=("parallel",),
            vmem_limit_bytes=32 * 1024 * 1024),
    )
    # NOTE: for production H*W this block should become a row-tiled grid with a
    # 1-row halo and per-generation tile sizes (v7x has 64 MiB VMEM); at these
    # shapes one image per step is optimal.
    y, s, ss = conv(x_nhwc, w2)

    # Tiny per-channel glue: finish the cross-image reduction, fold training-
    # mode BatchNorm (batch mean, biased variance) into scale & shift.
    cnt = float(N * H * W)
    mean = jnp.sum(s, axis=(0, 1)) / cnt
    var = jnp.sum(ss, axis=(0, 1)) / cnt - mean * mean
    var = jnp.maximum(var, 0.0)             # guard E[y^2]-E[y]^2 cancellation
    scale = gamma.astype(jnp.float32) * jax.lax.rsqrt(var + eps)
    shift = beta.astype(jnp.float32) - mean * scale
    # TODO(synk): nn.BatchNorm2d's running_mean/running_var buffer updates are
    # not reproduced (only the training-mode forward normalization).

    bn = pl.pallas_call(
        _bn_relu_kernel,
        out_shape=jax.ShapeDtypeStruct((N, Cout, HW), jnp.float32),
        grid_spec=pltpu.PrefetchScalarGridSpec(
            num_scalar_prefetch=0,
            grid=(N,),
            in_specs=[
                pl.BlockSpec((1, Cout, HW), lambda n: (n, 0, 0)),
                pl.BlockSpec((1, Cout, 1), lambda n: (0, 0, 0)),
                pl.BlockSpec((1, Cout, 1), lambda n: (0, 0, 0)),
            ],
            out_specs=pl.BlockSpec((1, Cout, HW), lambda n: (n, 0, 0)),
        ),
        compiler_params=pltpu.CompilerParams(
            dimension_semantics=("parallel",),
            vmem_limit_bytes=32 * 1024 * 1024),
        input_output_aliases={0: 0},        # ReLU writes in place over y
    )
    o = bn(y, scale.reshape(1, Cout, 1), shift.reshape(1, Cout, 1))

    # Contiguous reshape back to NCHW -- free, no relayout pass.
    return o.reshape(N, Cout, H, W)


# Pure-JAX f32 reference (same semantics), used only for the correctness check.
def _ref_forward(x, w, gamma, beta, eps=1e-5):
    y = jax.lax.conv_general_dilated(
        x, w, window_strides=(1, 1), padding=((1, 1), (1, 1)),
        dimension_numbers=("NCHW", "OIHW", "NCHW"))
    mean = jnp.mean(y, axis=(0, 2, 3), keepdims=True)
    var = jnp.var(y, axis=(0, 2, 3), keepdims=True)
    yhat = (y - mean) / jnp.sqrt(var + eps)
    out = yhat * gamma.reshape(1, -1, 1, 1) + beta.reshape(1, -1, 1, 1)
    return jnp.maximum(out, 0.0)


if __name__ == "__main__":
    N, Cin, Cout, H, W = 2, 4, 8, 16, 16

    key = jax.random.PRNGKey(0)
    kx, kw = jax.random.split(key)

    x = jax.random.normal(kx, (N, Cin, H, W), jnp.float32)

    # kaiming_normal_ (fan_in, gain=sqrt(2)) on the conv weight, done in-script.
    fan_in = Cin * 3 * 3
    w = jax.random.normal(kw, (Cout, Cin, 3, 3), jnp.float32) * jnp.sqrt(2.0 / fan_in)

    # BatchNorm2d init: gamma=1, beta=0.
    gamma = jnp.ones((Cout,), jnp.float32)
    beta = jnp.zeros((Cout,), jnp.float32)

    out = jax.jit(conv_block_forward)(x, w, gamma, beta)
    out = jax.block_until_ready(out)

    ref = _ref_forward(x, w, gamma, beta)
    assert out.shape == (N, Cout, H, W)
    max_err = float(jnp.max(jnp.abs(out - ref)))
    # bf16 MXU operands (per perf review) vs an f32 reference -> loose-ish tol.
    assert max_err < 3e-2, max_err

    print("KERNEL_OK")
</pallas_src>

<mosaic_0001>
module attributes {stable_mosaic.version = 11 : i64} {
  func.func @_conv_im2col_kernel(%arg0: i32, %arg1: memref<1x16x16x4xbf16, #tpu.memory_space<vmem>>, %arg2: memref<36x128xbf16, #tpu.memory_space<vmem>>, %arg3: memref<1x8x256xf32, #tpu.memory_space<vmem>>, %arg4: memref<1x1x8xf32, #tpu.memory_space<vmem>>, %arg5: memref<1x1x8xf32, #tpu.memory_space<vmem>>, %arg6: memref<18x18x4xf32, #tpu.memory_space<vmem>>) attributes {dimension_semantics = [#tpu.dimension_semantics<parallel>], iteration_bounds = array<i64: 2>, scalar_prefetch = 0 : i64, scratch_operands = 1 : i64, tpu.core_type = #tpu.core_type<tc>, window_params = [{transform_indices = @transform_0, window_bounds = array<i64: 1, 16, 16, 4>}, {pipeline_mode = #tpu.pipeline_mode<synchronous>, transform_indices = @transform_1, window_bounds = array<i64: 36, 128>}, {transform_indices = @transform_2, window_bounds = array<i64: 1, 8, 256>}, {transform_indices = @transform_3, window_bounds = array<i64: 1, 1, 8>}, {transform_indices = @transform_4, window_bounds = array<i64: 1, 1, 8>}]} {
    %cst = arith.constant 0.000000e+00 : f32
    %0 = vector.broadcast %cst : f32 to vector<18x18x4xf32>
    %c0 = arith.constant 0 : index
    %c0_0 = arith.constant 0 : index
    %c0_1 = arith.constant 0 : index
    %1 = vector.load %arg6[%c0, %c0_0, %c0_1] : memref<18x18x4xf32, #tpu.memory_space<vmem>>, vector<18x18x4xf32>
    tpu.vector_store %arg6[%c0, %c0_0, %c0_1], %0 {strides = array<i32>} : memref<18x18x4xf32, #tpu.memory_space<vmem>>, vector<18x18x4xf32>,
    %c0_2 = arith.constant 0 : index
    %c0_3 = arith.constant 0 : index
    %c0_4 = arith.constant 0 : index
    %c0_5 = arith.constant 0 : index
    %2 = vector.load %arg1[%c0_2, %c0_3, %c0_4, %c0_5] : memref<1x16x16x4xbf16, #tpu.memory_space<vmem>>, vector<1x16x16x4xbf16>
    %3 = vector.shape_cast %2 : vector<1x16x16x4xbf16> to vector<16x16x4xbf16>
    %4 = arith.extf %3 : vector<16x16x4xbf16> to vector<16x16x4xf32>
    %c1 = arith.constant 1 : index
    %c1_6 = arith.constant 1 : index
    %c0_7 = arith.constant 0 : index
    %5 = vector.load %arg6[%c1, %c1_6, %c0_7] : memref<18x18x4xf32, #tpu.memory_space<vmem>>, vector<16x16x4xf32>
    tpu.vector_store %arg6[%c1, %c1_6, %c0_7], %4 {strides = array<i32>} : memref<18x18x4xf32, #tpu.memory_space<vmem>>, vector<16x16x4xf32>,
    %c0_8 = arith.constant 0 : index
    %c0_9 = arith.constant 0 : index
    %c0_10 = arith.constant 0 : index
    %6 = vector.load %arg6[%c0_8, %c0_9, %c0_10] : memref<18x18x4xf32, #tpu.memory_space<vmem>>, vector<16x16x4xf32>
    %7 = vector.shape_cast %6 : vector<16x16x4xf32> to vector<256x4xf32>
    %c0_11 = arith.constant 0 : index
    %c1_12 = arith.constant 1 : index
    %c0_13 = arith.constant 0 : index
    %8 = vector.load %arg6[%c0_11, %c1_12, %c0_13] : memref<18x18x4xf32, #tpu.memory_space<vmem>>, vector<16x16x4xf32>
    %9 = vector.shape_cast %8 : vector<16x16x4xf32> to vector<256x4xf32>
    %c0_14 = arith.constant 0 : index
    %c2 = arith.constant 2 : index
    %c0_15 = arith.constant 0 : index
    %10 = vector.load %arg6[%c0_14, %c2, %c0_15] : memref<18x18x4xf32, #tpu.memory_space<vmem>>, vector<16x16x4xf32>
    %11 = vector.shape_cast %10 : vector<16x16x4xf32> to vector<256x4xf32>
    %c1_16 = arith.constant 1 : index
    %c0_17 = arith.constant 0 : index
    %c0_18 = arith.constant 0 : index
    %12 = vector.load %arg6[%c1_16, %c0_17, %c0_18] : memref<18x18x4xf32, #tpu.memory_space<vmem>>, vector<16x16x4xf32>
    %13 = vector.shape_cast %12 : vector<16x16x4xf32> to vector<256x4xf32>
    %c1_19 = arith.constant 1 : index
    %c1_20 = arith.constant 1 : index
    %c0_21 = arith.constant 0 : index
    %14 = vector.load %arg6[%c1_19, %c1_20, %c0_21] : memref<18x18x4xf32, #tpu.memory_space<vmem>>, vector<16x16x4xf32>
    %15 = vector.shape_cast %14 : vector<16x16x4xf32> to vector<256x4xf32>
    %c1_22 = arith.constant 1 : index
    %c2_23 = arith.constant 2 : index
    %c0_24 = arith.constant 0 : index
    %16 = vector.load %arg6[%c1_22, %c2_23, %c0_24] : memref<18x18x4xf32, #tpu.memory_space<vmem>>, vector<16x16x4xf32>
    %17 = vector.shape_cast %16 : vector<16x16x4xf32> to vector<256x4xf32>
    %c2_25 = arith.constant 2 : index
    %c0_26 = arith.constant 0 : index
    %c0_27 = arith.constant 0 : index
    %18 = vector.load %arg6[%c2_25, %c0_26, %c0_27] : memref<18x18x4xf32, #tpu.memory_space<vmem>>, vector<16x16x4xf32>
    %19 = vector.shape_cast %18 : vector<16x16x4xf32> to vector<256x4xf32>
    %c2_28 = arith.constant 2 : index
    %c1_29 = arith.constant 1 : index
    %c0_30 = arith.constant 0 : index
    %20 = vector.load %arg6[%c2_28, %c1_29, %c0_30] : memref<18x18x4xf32, #tpu.memory_space<vmem>>, vector<16x16x4xf32>
    %21 = vector.shape_cast %20 : vector<16x16x4xf32> to vector<256x4xf32>
    %c2_31 = arith.constant 2 : index
    %c2_32 = arith.constant 2 : index
    %c0_33 = arith.constant 0 : index
    %22 = vector.load %arg6[%c2_31, %c2_32, %c0_33] : memref<18x18x4xf32, #tpu.memory_space<vmem>>, vector<16x16x4xf32>
    %23 = vector.shape_cast %22 : vector<16x16x4xf32> to vector<256x4xf32>
    %24 = tpu.concatenate %7, %9, %11, %13, %15, %17, %19, %21, %23 in 1 : vector<256x4xf32>, vector<256x4xf32>, vector<256x4xf32>, vector<256x4xf32>, vector<256x4xf32>, vector<256x4xf32>, vector<256x4xf32>, vector<256x4xf32>, vector<256x4xf32> -> vector<256x36xf32>
    %25 = arith.truncf %24 : vector<256x36xf32> to vector<256x36xbf16>
    %c0_34 = arith.constant 0 : index
    %c0_35 = arith.constant 0 : index
    %26 = vector.load %arg2[%c0_34, %c0_35] : memref<36x128xbf16, #tpu.memory_space<vmem>>, vector<36x128xbf16>
    %cst_36 = arith.constant dense<0.000000e+00> : vector<256x128xf32>
    %27 = tpu.matmul %25, %26, %cst_36 {dimension_numbers = #tpu.dot_dimension_numbers<[1], [0], [0], [1], [0, 0, 1, 1], [], []>} : vector<256x36xbf16>, vector<36x128xbf16>, vector<256x128xf32> -> vector<256x128xf32>
    %cst_37 = arith.constant dense<0.000000e+00> : vector<128xf32>
    %28 = vector.multi_reduction <add>, %27, %cst_37 [0] : vector<256x128xf32> to vector<128xf32>
    %29 = vector.shape_cast %28 : vector<128xf32> to vector<1x128xf32>
    %30 = vector.extract_strided_slice %29 {offsets = [0, 0], sizes = [1, 8], strides = [1, 1]} : vector<1x128xf32> to vector<1x8xf32>
    %31 = vector.shape_cast %30 : vector<1x8xf32> to vector<1x1x8xf32>
    %c0_38 = arith.constant 0 : index
    %c0_39 = arith.constant 0 : index
    %c0_40 = arith.constant 0 : index
    %32 = vector.load %arg4[%c0_38, %c0_39, %c0_40] : memref<1x1x8xf32, #tpu.memory_space<vmem>>, vector<1x1x8xf32>
    tpu.vector_store %arg4[%c0_38, %c0_39, %c0_40], %31 {strides = array<i32>} : memref<1x1x8xf32, #tpu.memory_space<vmem>>, vector<1x1x8xf32>,
    %33 = arith.mulf %27, %27 : vector<256x128xf32>
    %cst_41 = arith.constant dense<0.000000e+00> : vector<128xf32>
    %34 = vector.multi_reduction <add>, %33, %cst_41 [0] : vector<256x128xf32> to vector<128xf32>
    %35 = vector.shape_cast %34 : vector<128xf32> to vector<1x128xf32>
    %36 = vector.extract_strided_slice %35 {offsets = [0, 0], sizes = [1, 8], strides = [1, 1]} : vector<1x128xf32> to vector<1x8xf32>
    %37 = vector.shape_cast %36 : vector<1x8xf32> to vector<1x1x8xf32>
    %c0_42 = arith.constant 0 : index
    %c0_43 = arith.constant 0 : index
    %c0_44 = arith.constant 0 : index
    %38 = vector.load %arg5[%c0_42, %c0_43, %c0_44] : memref<1x1x8xf32, #tpu.memory_space<vmem>>, vector<1x1x8xf32>
    tpu.vector_store %arg5[%c0_42, %c0_43, %c0_44], %37 {strides = array<i32>} : memref<1x1x8xf32, #tpu.memory_space<vmem>>, vector<1x1x8xf32>,
    %39 = tpu.transpose %27, [1, 0] : vector<256x128xf32> -> vector<128x256xf32>
    %40 = vector.extract_strided_slice %39 {offsets = [0, 0], sizes = [8, 256], strides = [1, 1]} : vector<128x256xf32> to vector<8x256xf32>
    %41 = vector.shape_cast %40 : vector<8x256xf32> to vector<1x8x256xf32>
    %c0_45 = arith.constant 0 : index
    %c0_46 = arith.constant 0 : index
    %c0_47 = arith.constant 0 : index
    %42 = vector.load %arg3[%c0_45, %c0_46, %c0_47] : memref<1x8x256xf32, #tpu.memory_space<vmem>>, vector<1x8x256xf32>
    tpu.vector_store %arg3[%c0_45, %c0_46, %c0_47], %41 {strides = array<i32>} : memref<1x8x256xf32, #tpu.memory_space<vmem>>, vector<1x8x256xf32>,
    return
  }
  func.func @transform_0(%arg0: i32) -> (i32, i32, i32, i32) {
    %c0_i32 = arith.constant 0 : i32
    %c0_i32_0 = arith.constant 0 : i32
    %c0_i32_1 = arith.constant 0 : i32
    %c0_i32_2 = arith.constant 0 : i32
    return %arg0, %c0_i32, %c0_i32_0, %c0_i32_1 : i32, i32, i32, i32
  }
  func.func @transform_1(%arg0: i32) -> (i32, i32) {
    %c0_i32 = arith.constant 0 : i32
    %c0_i32_0 = arith.constant 0 : i32
    %c0_i32_1 = arith.constant 0 : i32
    return %c0_i32, %c0_i32_0 : i32, i32
  }
  func.func @transform_2(%arg0: i32) -> (i32, i32, i32) {
    %c0_i32 = arith.constant 0 : i32
    %c0_i32_0 = arith.constant 0 : i32
    %c0_i32_1 = arith.constant 0 : i32
    return %arg0, %c0_i32, %c0_i32_0 : i32, i32, i32
  }
  func.func @transform_3(%arg0: i32) -> (i32, i32, i32) {
    %c0_i32 = arith.constant 0 : i32
    %c0_i32_0 = arith.constant 0 : i32
    %c0_i32_1 = arith.constant 0 : i32
    return %arg0, %c0_i32, %c0_i32_0 : i32, i32, i32
  }
  func.func @transform_4(%arg0: i32) -> (i32, i32, i32) {
    %c0_i32 = arith.constant 0 : i32
    %c0_i32_0 = arith.constant 0 : i32
    %c0_i32_1 = arith.constant 0 : i32
    return %arg0, %c0_i32, %c0_i32_0 : i32, i32, i32
  }
}

module attributes {stable_mosaic.version = 11 : i64} {
  func.func @_bn_relu_kernel(%arg0: i32, %arg1: memref<1x8x256xf32, #tpu.memory_space<vmem>>, %arg2: memref<1x8x1xf32, #tpu.memory_space<vmem>>, %arg3: memref<1x8x1xf32, #tpu.memory_space<vmem>>, %arg4: memref<1x8x256xf32, #tpu.memory_space<vmem>>) attributes {dimension_semantics = [#tpu.dimension_semantics<parallel>], iteration_bounds = array<i64: 2>, scalar_prefetch = 0 : i64, scratch_operands = 0 : i64, tpu.core_type = #tpu.core_type<tc>, window_params = [{transform_indices = @transform_0, window_bounds = array<i64: 1, 8, 256>}, {pipeline_mode = #tpu.pipeline_mode<synchronous>, transform_indices = @transform_1, window_bounds = array<i64: 1, 8, 1>}, {pipeline_mode = #tpu.pipeline_mode<synchronous>, transform_indices = @transform_2, window_bounds = array<i64: 1, 8, 1>}, {transform_indices = @transform_3, window_bounds = array<i64: 1, 8, 256>}]} {
    %c0 = arith.constant 0 : index
    %c0_0 = arith.constant 0 : index
    %c0_1 = arith.constant 0 : index
    %0 = vector.load %arg1[%c0, %c0_0, %c0_1] : memref<1x8x256xf32, #tpu.memory_space<vmem>>, vector<1x8x256xf32>
    %c0_2 = arith.constant 0 : index
    %c0_3 = arith.constant 0 : index
    %c0_4 = arith.constant 0 : index
    %1 = vector.load %arg2[%c0_2, %c0_3, %c0_4] : memref<1x8x1xf32, #tpu.memory_space<vmem>>, vector<1x8x1xf32>
    %2 = vector.broadcast %1 : vector<1x8x1xf32> to vector<1x8x256xf32>
    %3 = arith.mulf %0, %2 : vector<1x8x256xf32>
    %c0_5 = arith.constant 0 : index
    %c0_6 = arith.constant 0 : index
    %c0_7 = arith.constant 0 : index
    %4 = vector.load %arg3[%c0_5, %c0_6, %c0_7] : memref<1x8x1xf32, #tpu.memory_space<vmem>>, vector<1x8x1xf32>
    %5 = vector.broadcast %4 : vector<1x8x1xf32> to vector<1x8x256xf32>
    %6 = arith.addf %3, %5 : vector<1x8x256xf32>
    %cst = arith.constant 0.000000e+00 : f32
    %7 = vector.broadcast %cst : f32 to vector<1x8x256xf32>
    %8 = arith.maximumf %6, %7 : vector<1x8x256xf32>
    %c0_8 = arith.constant 0 : index
    %c0_9 = arith.constant 0 : index
    %c0_10 = arith.constant 0 : index
    %9 = vector.load %arg4[%c0_8, %c0_9, %c0_10] : memref<1x8x256xf32, #tpu.memory_space<vmem>>, vector<1x8x256xf32>
    tpu.vector_store %arg4[%c0_8, %c0_9, %c0_10], %8 {strides = array<i32>} : memref<1x8x256xf32, #tpu.memory_space<vmem>>, vector<1x8x256xf32>,
    return
  }
  func.func @transform_0(%arg0: i32) -> (i32, i32, i32) {
    %c0_i32 = arith.constant 0 : i32
    %c0_i32_0 = arith.constant 0 : i32
    %c0_i32_1 = arith.constant 0 : i32
    return %arg0, %c0_i32, %c0_i32_0 : i32, i32, i32
  }
  func.func @transform_1(%arg0: i32) -> (i32, i32, i32) {
    %c0_i32 = arith.constant 0 : i32
    %c0_i32_0 = arith.constant 0 : i32
    %c0_i32_1 = arith.constant 0 : i32
    %c0_i32_2 = arith.constant 0 : i32
    return %c0_i32, %c0_i32_0, %c0_i32_1 : i32, i32, i32
  }
  func.func @transform_2(%arg0: i32) -> (i32, i32, i32) {
    %c0_i32 = arith.constant 0 : i32
    %c0_i32_0 = arith.constant 0 : i32
    %c0_i32_1 = arith.constant 0 : i32
    %c0_i32_2 = arith.constant 0 : i32
    return %c0_i32, %c0_i32_0, %c0_i32_1 : i32, i32, i32
  }
  func.func @transform_3(%arg0: i32) -> (i32, i32, i32) {
    %c0_i32 = arith.constant 0 : i32
    %c0_i32_0 = arith.constant 0 : i32
    %c0_i32_1 = arith.constant 0 : i32
    return %arg0, %c0_i32, %c0_i32_0 : i32, i32, i32
  }
}

</mosaic_0001>

<bundles_post_ra>
// kernel: conv_block_forward.3
= control target key start
LH: loop header
LB: loop body
LE: loop exit
PB: predicated region body
PF: predicated region fallthrough
CT: control target
= control target key end

     0   :  { %s300_s12 = smov 0   ;;  %s323_s0 = inlined_call_operand.vmem [shape: f32[2,8,256], index: 0, kind: input, shape index: {}, may-alias: {0,3}]   ;;  %s324_s1 = inlined_call_operand.vmem [shape: f32[1,8,1], index: 1, kind: input, shape index: {}]   ;;  %s325_s2 = inlined_call_operand.vmem [shape: f32[1,8,1], index: 2, kind: input, shape index: {}]   ;;  %s326_s3 = inlined_call_operand.vmem [shape: f32[2,8,256], index: 3, kind: output, shape index: {}, may-alias: {0,3}]  }
   0x1 LB: > { %s248_s13 = sadd.s32 4294967295, %s277_s12   ;;  %p252_p0 = scmp.ge.s32.totalorder %s277_s12, 1  ;;  %s277_s12 = sphi %s300_s12, %s13_s12  }
   0x2   : > { %p137_p1 = scmp.lt.s32.totalorder %s277_s12, 3 }
   0x4   : > { %p138_p2 = pnand %p252_p0, %p137_p1 }
   0x5   : > { %p161_p3 = scmp.lt.s32.totalorder (!%p138_p2), %s248_s13, 1 }
   0x6   : > { %141 = sbr.rel (%p138_p2) target bundleno = 142 (0x8e), region = 32 }
   0xb   : > { %v173_v0 = vld [vmem:[%s324_s1] sm:$0xff]  ;;  %v279_v1 = vmov 0   ;;  %s328_s13 = smov (!%p161_p3, %s248_s13), 1 }
   0xc   : > { %270 = vset.pattern.permute.xlu0 %v279_v1  ;;  %v181_v2 = vld [vmem:[%s325_s2] sm:$0xff]  ;;  %s259_s18 = sshll.u32 %s328_s13, 4 }
   0xd   : > { %176 = vperm.xlu0 %270, %v173_v0   ;;  %s165_s21 = scalar_lea.vmem %s323_s0, %s259_s18  ;;  %s170_s24 = scalar_lea.vmem %s326_s3, %s259_s18 }
   0xe   : > { %v171_v4 = vld [vmem:[%s165_s21] sm:$0xff]  ;;  %v172_v5 = vld [vmem:[%s165_s21 + $0x8] sm:$0xff] }
  0x15   : > { %184 = vperm.xlu0 %270, %v181_v2  }
  0x7f   : > { %v177_v3 = vpop.permute.xlu0 %176 }
  0x80   : > { %v179_v6 = vmul.f32 %v177_v3, %v171_v4  ;;  %v180_v7 = vmul.f32 %v177_v3, %v172_v5 }
  0x87   : > { %v185_v8 = vpop.permute.xlu0 %184 }
  0x88   : > { %v187_v9 = vadd.f32 %v185_v8, %v179_v6  ;;  %v188_v10 = vadd.f32 %v185_v8, %v180_v7 }
  0x8a   : > { %v189_v11 = vmax.f32 %v187_v9, 0.0  ;;  %v190_v12 = vmax.f32 %v188_v10, 0.0 }
  0x8c   : > { %191 = vst [vmem:[%s170_s24] sm:$0xff] %v189_v11 }
  0x8d   : > { %192 = vst [vmem:[%s170_s24 + $0x8] sm:$0xff] %v190_v12 }
  0x8e PF: > { %s13_s12 = sadd.s32 1, %s277_s12  }
  0x8f   : > { %p10_p4 = scmp.ge.s32.totalorder %s13_s12, 4  }
  0x91   :  { %12 = sbr.rel (!%p10_p4) target bundleno = 1 (0x1), region = 62 }

// kernel: conv_block_forward.2
= control target key start
LH: loop header
LB: loop body
LE: loop exit
PB: predicated region body
PF: predicated region fallthrough
CT: control target
= control target key end

     0   :  { %s3229_s15 = smov 0   ;;  %s4607_s0 = inlined_call_operand.vmem [shape: bf16[2,16,16,4], index: 0, kind: input, shape index: {}]   ;;  %s4608_s1 = inlined_call_operand.vmem [shape: bf16[36,128], index: 1, kind: input, shape index: {}]   ;;  %s4609_s2 = inlined_call_operand.vmem [shape: f32[2,8,256], index: 2, kind: output, shape index: {0}]   ;;  %s4610_s3 = inlined_call_operand.vmem [shape: f32[2,1,8], index: 3, kind: output, shape index: {1}]   ;;  %s4611_s4 = inlined_call_operand.vmem [shape: f32[2,1,8], index: 4, kind: output, shape index: {2}]  }
   0x1 LB: > { %s2403_s16 = sadd.s32 4294967295, %s3193_s15   ;;  %p2407_p0 = scmp.ge.s32.totalorder %s3193_s15, 1  ;;  %s3193_s15 = sphi %s3229_s15, %s15_s15  }
   0x2   : > { %p167_p1 = scmp.lt.s32.totalorder %s3193_s15, 3 }
   0x4   : > { %p168_p2 = pnand %p2407_p0, %p167_p1 }
   0x6   : > { %171 = sbr.rel (%p168_p2) target bundleno = 771 (0x303), region = 28 }
   0xb   : > { %vm216_vm0 = vcmask 31744   ;;  %vm219_vm1 = vcmask 25600   ;;  %v3195_v0 = vmov 0.0   ;;  %s3196_s17 = smov 4   ;;  %p199_p3 = scmp.lt.s32.totalorder %s2403_s16, 1  ;;  %vm1714_vm2 = vcmask 64512  }
   0xc   : > { %217 = vst.msk [vmem:[#allocation2] sm:$0xff] %vm216_vm0, %v3195_v0  ;;  %s3197_s22 = smov 8   ;;  %s3198_s23 = smov 12   ;;  %vm1747_vm3 = vcmask 97280   ;;  %vm1780_vm4 = vcmask 130048   ;;  %vm1813_vm5 = vcmask 162816  }
   0xd   : > { %218 = vst.msk [vmem:[#allocation2 + $0x8] sm:$0xff] %vm216_vm0, %v3195_v0  ;;  %s4685_s16 = smov (!%p199_p3, %s2403_s16), 1  ;;  %s3199_s24 = smov 16   ;;  %vm1846_vm6 = vcmask 195584   ;;  %vm2030_vm7 = vcmask 1041408   ;;  %vm1879_vm8 = vcmask 228352  }
   0xe   : > { %220 = vst.msk [vmem:[#allocation2 + $0x10] sm:$0x3] %vm219_vm1, %v3195_v0  ;;  %s2438_s18 = sshll.u32 %s4685_s16, 7  ;;  %s3200_s25 = smov 20   ;;  %vm1912_vm9 = vcmask 261120   ;;  %vm1981_vm10 = vcmask 293888  }
   0xf   : > { %221 = vst.msk [vmem:[#allocation2 + $0x18] sm:$0xff] %vm216_vm0, %v3195_v0  ;;  %s3338_s21 = scalar_lea.vmem %s4607_s0, %s2438_s18  ;;  %s3201_s26 = smov 24   ;;  %vm2160_vm11 = vcmask 57344  }
  0x10   : > { %222 = vst.msk [vmem:[#allocation2 + $0x20] sm:$0xff] %vm216_vm0, %v3195_v0  ;;  %v2508_v4 = vld [vmem:[%s3338_s21 + $0x18] sm:$0xff]   ;;  %v2506_v5 = vld [vmem:[%s3338_s21 + $0x8] sm:$0xff]   ;;  %v2443_v8 = vld [vmem:[%s3338_s21] sm:$0xff]   ;;  %s3202_s27 = smov 28   ;;  %s3203_s28 = smov 32  }
  0x11   : > { %223 = vst.msk [vmem:[#allocation2 + $0x28] sm:$0x3] %vm219_vm1, %v3195_v0  ;;  %v2456_v6 = vunpack.c.l.bf16 %v2508_v4  ;;  %v2457_v7 = vunpack.c.h.bf16 %v2508_v4  ;;  %v2448_v9 = vunpack.c.l.bf16 %v2506_v5  ;;  %v2449_v10 = vunpack.c.h.bf16 %v2506_v5  ;;  %v2509_v11 = vld [vmem:[%s3338_s21 + $0x20] sm:$0xff]   ;;  %v2507_v14 = vld [vmem:[%s3338_s21 + $0x10] sm:$0xff]   ;;  %v2510_v17 = vld [vmem:[%s3338_s21 + $0x28] sm:$0xff]   ;;  %s211_s11 = scalar_lea.vmem %s4610_s3, %s4685_s16  ;;  %s214_s14 = scalar_lea.vmem %s4611_s4, %s4685_s16 }
  0x12   : > { %224 = vst.msk [vmem:[#allocation2 + $0x30] sm:$0xff] %vm216_vm0, %v3195_v0  ;;  %v2444_v12 = vunpack.c.l.bf16 %v2443_v8  ;;  %v2445_v13 = vunpack.c.h.bf16 %v2443_v8  ;;  %v2460_v15 = vunpack.c.l.bf16 %v2509_v11  ;;  %v2461_v16 = vunpack.c.h.bf16 %v2509_v11  ;;  %v2512_v20 = vld [vmem:[%s3338_s21 + $0x38] sm:$0xff]   ;;  %v2511_v24 = vld [vmem:[%s3338_s21 + $0x30] sm:$0xff]   ;;  %v2513_v30 = vld [vmem:[%s3338_s21 + $0x40] sm:$0xff]  }
  0x13   : > { %225 = vst.msk [vmem:[#allocation2 + $0x38] sm:$0xff] %vm216_vm0, %v3195_v0  ;;  %v2452_v18 = vunpack.c.l.bf16 %v2507_v14  ;;  %v2453_v19 = vunpack.c.h.bf16 %v2507_v14  ;;  %v2464_v21 = vunpack.c.l.bf16 %v2510_v17  ;;  %v2465_v23 = vunpack.c.h.bf16 %v2510_v17  ;;  %v2515_v36 = vld [vmem:[%s3338_s21 + $0x50] sm:$0xff]   ;;  %v2514_v42 = vld [vmem:[%s3338_s21 + $0x48] sm:$0xff]   ;;  %v2516_v48 = vld [vmem:[%s3338_s21 + $0x58] sm:$0xff]  }
  0x14   : > { %v401_v1 = vld [vmem:[#allocation2 + $0x1] sm:$0xff]  ;;  %226 = vst.msk [vmem:[#allocation2 + $0x40] sm:$0x3] %vm219_vm1, %v3195_v0  ;;  %v2472_v26 = vunpack.c.l.bf16 %v2512_v20  ;;  %v2473_v29 = vunpack.c.h.bf16 %v2512_v20  ;;  %v2468_v32 = vunpack.c.l.bf16 %v2511_v24  ;;  %v2469_v35 = vunpack.c.h.bf16 %v2511_v24 }
  0x15   : > { %v402_v2 = vld [vmem:[#allocation2 + $0x9] sm:$0xff]  ;;  %227 = vst.msk [vmem:[#allocation2 + $0x48] sm:$0xff] %vm216_vm0, %v3195_v0  ;;  %v2476_v38 = vunpack.c.l.bf16 %v2513_v30  ;;  %v2477_v41 = vunpack.c.h.bf16 %v2513_v30  ;;  %v2484_v44 = vunpack.c.l.bf16 %v2515_v36  ;;  %v2485_v47 = vunpack.c.h.bf16 %v2515_v36  ;;  %v2517_v59 = vld [vmem:[%s3338_s21 + $0x60] sm:$0xff]  }
  0x16   : > { %v2547_v3 = vpack.i.bf16 %v402_v2, %v401_v1  ;;  %228 = vst.msk [vmem:[#allocation2 + $0x50] sm:$0xff] %vm216_vm0, %v3195_v0  ;;  %v2480_v50 = vunpack.c.l.bf16 %v2514_v42  ;;  %v2481_v53 = vunpack.c.h.bf16 %v2514_v42  ;;  %v2518_v54 = vld [vmem:[%s3338_s21 + $0x68] sm:$0xff]   ;;  %v2488_v56 = vunpack.c.l.bf16 %v2516_v48 }
  0x17   : > { %229 = vst.msk [vmem:[#allocation2 + $0x58] sm:$0x3] %vm219_vm1, %v3195_v0  ;;  %v2489_v58 = vunpack.c.h.bf16 %v2516_v48  ;;  %v2496_v62 = vunpack.c.l.bf16 %v2518_v54  ;;  %v2497_v63 = vunpack.c.h.bf16 %v2518_v54  ;;  %v2493_v5 = vunpack.c.h.bf16 %v2517_v59 }
  0x18   : > { %2548 = vrot.lane.b32.xlu0 %v2547_v3, %s3196_s17  ;;  %230 = vst.msk [vmem:[#allocation2 + $0x60] sm:$0xff] %vm216_vm0, %v3195_v0  ;;  %v2492_v3 = vunpack.c.l.bf16 %v2517_v59 }
  0x19   : > { %231 = vst.msk [vmem:[#allocation2 + $0x68] sm:$0xff] %vm216_vm0, %v3195_v0 }
  0x1a   : > { %232 = vst.msk [vmem:[#allocation2 + $0x70] sm:$0x3] %vm219_vm1, %v3195_v0 }
  0x1b   : > { %233 = vst.msk [vmem:[#allocation2 + $0x78] sm:$0xff] %vm216_vm0, %v3195_v0 }
  0x1c   : > { %234 = vst.msk [vmem:[#allocation2 + $0x80] sm:$0xff] %vm216_vm0, %v3195_v0 }
  0x1d   : > { %235 = vst.msk [vmem:[#allocation2 + $0x88] sm:$0x3] %vm219_vm1, %v3195_v0 }
  0x1e   : > { %236 = vst.msk [vmem:[#allocation2 + $0x90] sm:$0xff] %vm216_vm0, %v3195_v0 }
  0x1f   : > { %237 = vst.msk [vmem:[#allocation2 + $0x98] sm:$0xff] %vm216_vm0, %v3195_v0 }
  0x20   : > { %238 = vst.msk [vmem:[#allocation2 + $0xa0] sm:$0x3] %vm219_vm1, %v3195_v0 }
  0x21   : > { %239 = vst.msk [vmem:[#allocation2 + $0xa8] sm:$0xff] %vm216_vm0, %v3195_v0 }
  0x22   : > { %240 = vst.msk [vmem:[#allocation2 + $0xb0] sm:$0xff] %vm216_vm0, %v3195_v0 }
  0x23   : > { %241 = vst.msk [vmem:[#allocation2 + $0xb8] sm:$0x3] %vm219_vm1, %v3195_v0 }
  0x24   : > { %242 = vst.msk [vmem:[#allocation2 + $0xc0] sm:$0xff] %vm216_vm0, %v3195_v0 }
  0x25   : > { %243 = vst.msk [vmem:[#allocation2 + $0xc8] sm:$0xff] %vm216_vm0, %v3195_v0 }
  0x26   : > { %244 = vst.msk [vmem:[#allocation2 + $0xd0] sm:$0x3] %vm219_vm1, %v3195_v0 }
  0x27   : > { %245 = vst.msk [vmem:[#allocation2 + $0xd8] sm:$0xff] %vm216_vm0, %v3195_v0 }
  0x28   : > { %246 = vst.msk [vmem:[#allocation2 + $0xe0] sm:$0xff] %vm216_vm0, %v3195_v0 }
  0x29   : > { %247 = vst.msk [vmem:[#allocation2 + $0xe8] sm:$0x3] %vm219_vm1, %v3195_v0 }
  0x2a   : > { %248 = vst.msk [vmem:[#allocation2 + $0xf0] sm:$0xff] %vm216_vm0, %v3195_v0 }
  0x2b   : > { %249 = vst.msk [vmem:[#allocation2 + $0xf8] sm:$0xff] %vm216_vm0, %v3195_v0 }
  0x2c   : > { %250 = vst.msk [vmem:[#allocation2 + $0x100] sm:$0x3] %vm219_vm1, %v3195_v0 }
  0x2d   : > { %251 = vst.msk [vmem:[#allocation2 + $0x108] sm:$0xff] %vm216_vm0, %v3195_v0 }
  0x2e   : > { %252 = vst.msk [vmem:[#allocation2 + $0x110] sm:$0xff] %vm216_vm0, %v3195_v0 }
  0x2f   : > { %253 = vst.msk [vmem:[#allocation2 + $0x118] sm:$0x3] %vm219_vm1, %v3195_v0 }
  0x30   : > { %254 = vst.msk [vmem:[#allocation2 + $0x120] sm:$0xff] %vm216_vm0, %v3195_v0 }
  0x31   : > { %255 = vst.msk [vmem:[#allocation2 + $0x128] sm:$0xff] %vm216_vm0, %v3195_v0 }
  0x32   : > { %256 = vst.msk [vmem:[#allocation2 + $0x130] sm:$0x3] %vm219_vm1, %v3195_v0 }
  0x33   : > { %257 = vst.msk [vmem:[#allocation2 + $0x138] sm:$0xff] %vm216_vm0, %v3195_v0 }
  0x34   : > { %258 = vst.msk [vmem:[#allocation2 + $0x140] sm:$0xff] %vm216_vm0, %v3195_v0 }
  0x35   : > { %259 = vst.msk [vmem:[#allocation2 + $0x148] sm:$0x3] %vm219_vm1, %v3195_v0 }
  0x36   : > { %260 = vst.msk [vmem:[#allocation2 + $0x150] sm:$0xff] %vm216_vm0, %v3195_v0 }
  0x37   : > { %261 = vst.msk [vmem:[#allocation2 + $0x158] sm:$0xff] %vm216_vm0, %v3195_v0 }
  0x38   : > { %262 = vst.msk [vmem:[#allocation2 + $0x160] sm:$0x3] %vm219_vm1, %v3195_v0 }
  0x39   : > { %263 = vst.msk [vmem:[#allocation2 + $0x168] sm:$0xff] %vm216_vm0, %v3195_v0 }
  0x3a   : > { %264 = vst.msk [vmem:[#allocation2 + $0x170] sm:$0xff] %vm216_vm0, %v3195_v0 }
  0x3b   : > { %265 = vst.msk [vmem:[#allocation2 + $0x178] sm:$0x3] %vm219_vm1, %v3195_v0 }
  0x3c   : > { %266 = vst.msk [vmem:[#allocation2 + $0x180] sm:$0xff] %vm216_vm0, %v3195_v0 }
  0x3d   : > { %267 = vst.msk [vmem:[#allocation2 + $0x188] sm:$0xff] %vm216_vm0, %v3195_v0 }
  0x3e   : > { %268 = vst.msk [vmem:[#allocation2 + $0x190] sm:$0x3] %vm219_vm1, %v3195_v0 }
  0x3f   : > { %269 = vst.msk [vmem:[#allocation2 + $0x198] sm:$0xff] %vm216_vm0, %v3195_v0 }
  0x40   : > { %270 = vst.msk [vmem:[#allocation2 + $0x1a0] sm:$0xff] %vm216_vm0, %v3195_v0 }
  0x41   : > { %271 = vst.msk [vmem:[#allocation2 + $0x1a8] sm:$0x3] %vm219_vm1, %v3195_v0  ;;  %v2519_v0 = vld [vmem:[%s3338_s21 + $0x70] sm:$0xff]  }
  0x42   : > { %343 = vst.msk [vmem:[#allocation2 + $0x61] sm:$0xff] %vm216_vm0, %v2456_v6  ;;  %v2500_v8 = vunpack.c.l.bf16 %v2519_v0 }
  0x43   : > { %344 = vst.msk [vmem:[#allocation2 + $0x69] sm:$0xff] %vm216_vm0, %v2457_v7 }
  0x44   : > { %339 = vst.msk [vmem:[#allocation2 + $0x31] sm:$0xff] %vm216_vm0, %v2448_v9 }
  0x45   : > { %340 = vst.msk [vmem:[#allocation2 + $0x39] sm:$0xff] %vm216_vm0, %v2449_v10  ;;  %v2501_v10 = vunpack.c.h.bf16 %v2519_v0 }
  0x46   : > { %337 = vst.msk [vmem:[#allocation2 + $0x19] sm:$0xff] %vm216_vm0, %v2444_v12 }
  0x47   : > { %338 = vst.msk [vmem:[#allocation2 + $0x21] sm:$0xff] %vm216_vm0, %v2445_v13 }
  0x48   : > { %345 = vst.msk [vmem:[#allocation2 + $0x79] sm:$0xff] %vm216_vm0, %v2460_v15 }
  0x49   : > { %v409_v22 = vld [vmem:[#allocation2 + $0x61] sm:$0xff]  ;;  %346 = vst.msk [vmem:[#allocation2 + $0x81] sm:$0xff] %vm216_vm0, %v2461_v16 }
  0x4a   : > { %v410_v25 = vld [vmem:[#allocation2 + $0x69] sm:$0xff]  ;;  %341 = vst.msk [vmem:[#allocation2 + $0x49] sm:$0xff] %vm216_vm0, %v2452_v18 }
  0x4b   : > { %v3375_v27 = vpack.i.bf16 %v410_v25, %v409_v22  ;;  %v405_v28 = vld [vmem:[#allocation2 + $0x31] sm:$0xff]  ;;  %342 = vst.msk [vmem:[#allocation2 + $0x51] sm:$0xff] %vm216_vm0, %v2453_v19  ;;  %v441_v42 = vld [vmem:[#allocation2 + $0x62] sm:$0xff] }
  0x4c   : > { %v406_v31 = vld [vmem:[#allocation2 + $0x39] sm:$0xff]  ;;  %347 = vst.msk [vmem:[#allocation2 + $0x91] sm:$0xff] %vm216_vm0, %v2464_v21 }
  0x4d   : > { %2568 = vrot.lane.b32.xlu2 %v3375_v27, %s3196_s17  ;;  %v3382_v33 = vpack.i.bf16 %v406_v31, %v405_v28  ;;  %v403_v34 = vld [vmem:[#allocation2 + $0x19] sm:$0xff]  ;;  %348 = vst.msk [vmem:[#allocation2 + $0x99] sm:$0xff] %vm216_vm0, %v2465_v23 }
  0x4e   : > { %v404_v37 = vld [vmem:[#allocation2 + $0x21] sm:$0xff]  ;;  %351 = vst.msk [vmem:[#allocation2 + $0xc1] sm:$0xff] %vm216_vm0, %v2472_v26 }
  0x4f   : > { %2558 = vrot.lane.b32.xlu1 %v3382_v33, %s3196_s17  ;;  %v3389_v39 = vpack.i.bf16 %v404_v37, %v403_v34  ;;  %v411_v40 = vld [vmem:[#allocation2 + $0x79] sm:$0xff]  ;;  %352 = vst.msk [vmem:[#allocation2 + $0xc9] sm:$0xff] %vm216_vm0, %v2473_v29  ;;  %v433_v34 = vld [vmem:[#allocation2 + $0x2] sm:$0xff] }
  0x50   : > { %v412_v43 = vld [vmem:[#allocation2 + $0x81] sm:$0xff]  ;;  %349 = vst.msk [vmem:[#allocation2 + $0xa9] sm:$0xff] %vm216_vm0, %v2468_v32  ;;  %v437_v37 = vld [vmem:[#allocation2 + $0x32] sm:$0xff] }
  0x51   : > { %2553 = vrot.lane.b32.xlu0 %v3389_v39, %s3196_s17  ;;  %v3396_v45 = vpack.i.bf16 %v412_v43, %v411_v40  ;;  %v407_v46 = vld [vmem:[#allocation2 + $0x49] sm:$0xff]  ;;  %350 = vst.msk [vmem:[#allocation2 + $0xb1] sm:$0xff] %vm216_vm0, %v2469_v35  ;;  %v435_v31 = vld [vmem:[#allocation2 + $0x1a] sm:$0xff] }
  0x52   : > { %v408_v49 = vld [vmem:[#allocation2 + $0x51] sm:$0xff]  ;;  %353 = vst.msk [vmem:[#allocation2 + $0xd9] sm:$0xff] %vm216_vm0, %v2476_v38  ;;  %v436_v32 = vld [vmem:[#allocation2 + $0x22] sm:$0xff]  ;;  %v438_v38 = vld [vmem:[#allocation2 + $0x3a] sm:$0xff] }
  0x53   : > { %v3401_v51 = vpack.i.bf16 %v408_v49, %v407_v46  ;;  %v413_v52 = vld [vmem:[#allocation2 + $0x91] sm:$0xff]  ;;  %354 = vst.msk [vmem:[#allocation2 + $0xe1] sm:$0xff] %vm216_vm0, %v2477_v41  ;;  %v3463_v36 = vpack.i.bf16 %v436_v32, %v435_v31  ;;  %v3467_v41 = vpack.i.bf16 %v438_v38, %v437_v37  ;;  %v443_v48 = vld [vmem:[#allocation2 + $0x7a] sm:$0xff]  ;;  %v444_v49 = vld [vmem:[#allocation2 + $0x82] sm:$0xff] }
  0x54   : > { %v414_v55 = vld [vmem:[#allocation2 + $0x99] sm:$0xff]  ;;  %357 = vst.msk [vmem:[#allocation2 + $0x109] sm:$0xff] %vm216_vm0, %v2484_v44  ;;  %v434_v35 = vld [vmem:[#allocation2 + $0xa] sm:$0xff] }
  0x55   : > { %2573 = vrot.lane.b32.xlu2 %v3396_v45, %s3196_s17  ;;  %v3408_v57 = vpack.i.bf16 %v414_v55, %v413_v52  ;;  %358 = vst.msk [vmem:[#allocation2 + $0x111] sm:$0xff] %vm216_vm0, %v2485_v47  ;;  %v417_v60 = vld [vmem:[#allocation2 + $0xc1] sm:$0xff]  ;;  %v2627_v40 = vpack.i.bf16 %v434_v35, %v433_v34  ;;  %v442_v43 = vld [vmem:[#allocation2 + $0x6a] sm:$0xff]  ;;  %v440_v46 = vld [vmem:[#allocation2 + $0x52] sm:$0xff]  ;;  %v3478_v52 = vpack.i.bf16 %v444_v49, %v443_v48 }
  0x56   : > { %v418_v61 = vld [vmem:[#allocation2 + $0xc9] sm:$0xff]  ;;  %355 = vst.msk [vmem:[#allocation2 + $0xf1] sm:$0xff] %vm216_vm0, %v2480_v50  ;;  %v3472_v47 = vpack.i.bf16 %v442_v43, %v441_v42  ;;  %v445_v55 = vld [vmem:[#allocation2 + $0x92] sm:$0xff]  ;;  %v471_v43 = vld [vmem:[#allocation2 + $0x60] sm:$0xff] }
  0x57   : > { %2563 = vrot.lane.b32.xlu1 %v3401_v51, %s3196_s17  ;;  %356 = vst.msk [vmem:[#allocation2 + $0xf9] sm:$0xff] %vm216_vm0, %v2481_v53  ;;  %v415_v1 = vld [vmem:[#allocation2 + $0xa9] sm:$0xff]  ;;  %v3420_v4 = vpack.i.bf16 %v418_v61, %v417_v60  ;;  %v3528_v34 = vld [vmem:[#allocation2 + $0x38] sm:$0xff] }
  0x58   : > { %v416_v2 = vld [vmem:[#allocation2 + $0xb1] sm:$0xff]  ;;  %359 = vst.msk [vmem:[#allocation2 + $0x121] sm:$0xff] %vm216_vm0, %v2488_v56  ;;  %v446_v56 = vld [vmem:[#allocation2 + $0x9a] sm:$0xff]  ;;  %v449_v59 = vld [vmem:[#allocation2 + $0xc2] sm:$0xff] }
  0x59   : > { %2578 = vrot.lane.b32.xlu0 %v3408_v57, %s3196_s17  ;;  %360 = vst.msk [vmem:[#allocation2 + $0x129] sm:$0xff] %vm216_vm0, %v2489_v58  ;;  %v419_v6 = vld [vmem:[#allocation2 + $0xd9] sm:$0xff]  ;;  %v3424_v9 = vpack.i.bf16 %v416_v2, %v415_v1  ;;  %v439_v44 = vld [vmem:[#allocation2 + $0x4a] sm:$0xff]  ;;  %v3486_v61 = vpack.i.bf16 %v446_v56, %v445_v55 }
  0x5a   : > { %v420_v7 = vld [vmem:[#allocation2 + $0xe1] sm:$0xff]  ;;  %363 = vst.msk [vmem:[#allocation2 + $0x151] sm:$0xff] %vm216_vm0, %v2496_v62  ;;  %v3474_v50 = vpack.i.bf16 %v440_v46, %v439_v44  ;;  %v447_v53 = vld [vmem:[#allocation2 + $0xaa] sm:$0xff]  ;;  %v448_v54 = vld [vmem:[#allocation2 + $0xb2] sm:$0xff] }
  0x5b   : > { %364 = vst.msk [vmem:[#allocation2 + $0x159] sm:$0xff] %vm216_vm0, %v2497_v63  ;;  %v3430_v11 = vpack.i.bf16 %v420_v7, %v419_v6  ;;  %v423_v12 = vld [vmem:[#allocation2 + $0x109] sm:$0xff]  ;;  %v3484_v58 = vpack.i.bf16 %v448_v54, %v447_v53  ;;  %v451_v1 = vld [vmem:[#allocation2 + $0xda] sm:$0xff] }
  0x5c   : > { %361 = vst.msk [vmem:[#allocation2 + $0x139] sm:$0xff] %vm216_vm0, %v2492_v3  ;;  %v424_v13 = vld [vmem:[#allocation2 + $0x111] sm:$0xff]  ;;  %v452_v2 = vld [vmem:[#allocation2 + $0xe2] sm:$0xff] }
  0x5d   : > { %2588 = vrot.lane.b32.xlu2 %v3420_v4, %s3196_s17  ;;  %362 = vst.msk [vmem:[#allocation2 + $0x141] sm:$0xff] %vm216_vm0, %v2493_v5  ;;  %v421_v14 = vld [vmem:[#allocation2 + $0xf1] sm:$0xff]  ;;  %v3439_v16 = vpack.i.bf16 %v424_v13, %v423_v12  ;;  %v3498_v7 = vpack.i.bf16 %v452_v2, %v451_v1  ;;  %v472_v44 = vld [vmem:[#allocation2 + $0x68] sm:$0xff]  ;;  %v474_v54 = vld [vmem:[#allocation2 + $0x80] sm:$0xff] }
  0x5e   : > { %365 = vst.msk [vmem:[#allocation2 + $0x169] sm:$0xff] %vm216_vm0, %v2500_v8  ;;  %v422_v15 = vld [vmem:[#allocation2 + $0xf9] sm:$0xff]  ;;  %v450_v60 = vld [vmem:[#allocation2 + $0xca] sm:$0xff]  ;;  %v3548_v49 = vpack.i.bf16 %v472_v44, %v471_v43 }
  0x5f   : > { %2583 = vrot.lane.b32.xlu1 %v3424_v9, %s3196_s17  ;;  %366 = vst.msk [vmem:[#allocation2 + $0x171] sm:$0xff] %vm216_vm0, %v2501_v10  ;;  %v425_v17 = vld [vmem:[#allocation2 + $0x121] sm:$0xff]  ;;  %v3441_v19 = vpack.i.bf16 %v422_v15, %v421_v14  ;;  %v3490_v62 = vpack.i.bf16 %v450_v60, %v449_v59  ;;  %v453_v63 = vld [vmem:[#allocation2 + $0xf2] sm:$0xff]  ;;  %v455_v5 = vld [vmem:[#allocation2 + $0x10a] sm:$0xff] }
  0x60   : > { %v426_v18 = vld [vmem:[#allocation2 + $0x129] sm:$0xff]  ;;  %v454_v0 = vld [vmem:[#allocation2 + $0xfa] sm:$0xff]  ;;  %v456_v6 = vld [vmem:[#allocation2 + $0x112] sm:$0xff]  ;;  %4637 = vst [vmem:[#allocation4_spill] sm:$0xff] %v3498_v7 }
  0x61   : > { %2593 = vrot.lane.b32.xlu0 %v3430_v11, %s3196_s17  ;;  %v3445_v20 = vpack.i.bf16 %v426_v18, %v425_v17  ;;  %v429_v21 = vld [vmem:[#allocation2 + $0x151] sm:$0xff]  ;;  %v3496_v3 = vpack.i.bf16 %v454_v0, %v453_v63  ;;  %v3502_v8 = vpack.i.bf16 %v456_v6, %v455_v5  ;;  %v457_v13 = vld [vmem:[#allocation2 + $0x122] sm:$0xff]  ;;  %4644 = vst [vmem:[#allocation11_spill] sm:$0xff] %v3548_v49 }
  0x62   : > { %v430_v22 = vld [vmem:[#allocation2 + $0x159] sm:$0xff]  ;;  %v458_v14 = vld [vmem:[#allocation2 + $0x12a] sm:$0xff] }
  0x63   : > { %v427_v23 = vld [vmem:[#allocation2 + $0x139] sm:$0xff]  ;;  %v3451_v25 = vpack.i.bf16 %v430_v22, %v429_v21  ;;  %4636 = vst [vmem:[#allocation3_spill] sm:$0xff] %v3496_v3  ;;  %v3510_v21 = vpack.i.bf16 %v458_v14, %v457_v13  ;;  %v3526_v32 = vld [vmem:[#allocation2 + $0x30] sm:$0xff]  ;;  %v3541_v46 = vld [vmem:[#allocation2 + $0x48] sm:$0xff] }
  0x64   : > { %v428_v24 = vld [vmem:[#allocation2 + $0x141] sm:$0xff]  ;;  %4638 = vst [vmem:[#allocation5_spill] sm:$0xff] %v3502_v8  ;;  %v461_v17 = vld [vmem:[#allocation2 + $0x152] sm:$0xff]  ;;  %v3536_v38 = vpack.i.bf16 %v3528_v34, %v3526_v32 }
  0x65   : > { %2603 = vrot.lane.b32.xlu2 %v3439_v16, %s3196_s17  ;;  %v431_v26 = vld [vmem:[#allocation2 + $0x169] sm:$0xff]  ;;  %v3453_v29 = vpack.i.bf16 %v428_v24, %v427_v23  ;;  %v459_v10 = vld [vmem:[#allocation2 + $0x13a] sm:$0xff]  ;;  %4640 = vst [vmem:[#allocation7_spill] sm:$0xff] %v3510_v21 }
  0x66   : > { %v432_v28 = vld [vmem:[#allocation2 + $0x171] sm:$0xff]  ;;  %v460_v12 = vld [vmem:[#allocation2 + $0x142] sm:$0xff]  ;;  %v462_v18 = vld [vmem:[#allocation2 + $0x15a] sm:$0xff]  ;;  %4643 = vst [vmem:[#allocation10_spill] sm:$0xff] %v3536_v38 }
  0x67   : > { %2598 = vrot.lane.b32.xlu1 %v3441_v19, %s3196_s17  ;;  %v3457_v30 = vpack.i.bf16 %v432_v28, %v431_v26  ;;  %v3508_v15 = vpack.i.bf16 %v460_v12, %v459_v10  ;;  %v3514_v22 = vpack.i.bf16 %v462_v18, %v461_v17  ;;  %v3516_v23 = vld [vmem:[#allocation2 + $0x18] sm:$0xff]  ;;  %v3518_v24 = vld [vmem:[#allocation2 + $0x20] sm:$0xff]  ;;  %v463_v26 = vld [vmem:[#allocation2 + $0x16a] sm:$0xff] }
  0x68   : > { %v464_v28 = vld [vmem:[#allocation2 + $0x172] sm:$0xff]  ;;  %v2707_v31 = vpack.i.bf16 %v3518_v24, %v3516_v23  ;;  %v3558_v59 = vld [vmem:[#allocation2 + $0xa8] sm:$0xff]  ;;  %v479_v13 = vld [vmem:[#allocation2 + $0xc0] sm:$0xff] }
  0x69   : > { %2608 = vrot.lane.b32.xlu0 %v3445_v20, %s3196_s17  ;;  %4639 = vst [vmem:[#allocation6_spill] sm:$0xff] %v3508_v15  ;;  %v3530_v35 = vpack.i.bf16 %v464_v28, %v463_v26  ;;  %v2520_v37 = vld [vmem:[%s3338_s21 + $0x78] sm:$0xff]   ;;  %v3543_v48 = vld [vmem:[#allocation2 + $0x50] sm:$0xff]  ;;  %v480_v14 = vld [vmem:[#allocation2 + $0xc8] sm:$0xff] }
  0x6a   : > { %4641 = vst [vmem:[#allocation8_spill] sm:$0xff] %v3514_v22  ;;  %v2505_v42 = vunpack.c.h.bf16 %v2520_v37  ;;  %v473_v53 = vld [vmem:[#allocation2 + $0x78] sm:$0xff]  ;;  %v3552_v55 = vpack.i.bf16 %v3543_v48, %v3541_v46  ;;  %v3560_v60 = vld [vmem:[#allocation2 + $0xb0] sm:$0xff]  ;;  %v3586_v18 = vpack.i.bf16 %v480_v14, %v479_v13 }
  0x6b   : > { %4642 = vst [vmem:[#allocation9_spill] sm:$0xff] %v3530_v35  ;;  %v3556_v56 = vpack.i.bf16 %v474_v54, %v473_v53  ;;  %v3564_v2 = vld [vmem:[#allocation2 + $0x90] sm:$0xff]  ;;  %v3566_v5 = vld [vmem:[#allocation2 + $0x98] sm:$0xff]  ;;  %v3572_v6 = vpack.i.bf16 %v3560_v60, %v3558_v59 }
  0x6c   : > { %368 = vst.msk [vmem:[#allocation2 + $0x189] sm:$0xff] %vm216_vm0, %v2505_v42  ;;  %v3582_v17 = vpack.i.bf16 %v3566_v5, %v3564_v2  ;;  %v3588_v26 = vld [vmem:[#allocation2 + $0xf0] sm:$0xff]  ;;  %v3590_v28 = vld [vmem:[#allocation2 + $0xf8] sm:$0xff] }
  0x6d   : > { %2618 = vrot.lane.b32.xlu2 %v3451_v25, %s3196_s17  ;;  %4645 = vst [vmem:[#allocation12_spill] sm:$0xff] %v3552_v55  ;;  %v3594_v42 = vld [vmem:[#allocation2 + $0xd8] sm:$0xff] }
  0x6e   : > { %4646 = vst [vmem:[#allocation13_spill] sm:$0xff] %v3556_v56 }
  0x6f   : > { %2613 = vrot.lane.b32.xlu1 %v3453_v29, %s3196_s17  ;;  %4647 = vst [vmem:[#allocation14_spill] sm:$0xff] %v3572_v6 }
  0x70   : > { %4648 = vst [vmem:[#allocation15_spill] sm:$0xff] %v3582_v17 }
  0x71   : > { %2623 = vrot.lane.b32.xlu0 %v3457_v30, %s3196_s17  ;;  %4649 = vst [vmem:[#allocation16_spill] sm:$0xff] %v3586_v18  ;;  %s2439_s17 = sshll.u32 %s4685_s16, 4 }
  0x72   : > { %s208_s20 = scalar_lea.vmem %s4609_s2, %s2439_s17 }
  0x75   : > { %2633 = vrot.lane.b32.xlu2 %v3463_v36, %s3197_s22 }
  0x77   : > { %2628 = vrot.lane.b32.xlu1 %v2627_v40, %s3197_s22  ;;  %v2504_v40 = vunpack.c.l.bf16 %v2520_v37 }
  0x79   : > { %2638 = vrot.lane.b32.xlu0 %v3467_v41, %s3197_s22  ;;  %367 = vst.msk [vmem:[#allocation2 + $0x181] sm:$0xff] %vm216_vm0, %v2504_v40 }
  0x7d   : > { %2648 = vrot.lane.b32.xlu2 %v3472_v47, %s3197_s22 }
  0x7f   : > { %2643 = vrot.lane.b32.xlu1 %v3474_v50, %s3197_s22 }
  0x81   : > { %2653 = vrot.lane.b32.xlu0 %v3478_v52, %s3197_s22 }
  0x85   : > { %2663 = vrot.lane.b32.xlu2 %v3484_v58, %s3197_s22 }
  0x87   : > { %2658 = vrot.lane.b32.xlu1 %v3486_v61, %s3197_s22 }
  0x89   : > { %2668 = vrot.lane.b32.xlu0 %v3490_v62, %s3197_s22 }
  0x8d   : > { %2678 = vrot.lane.b32.xlu2 %v3496_v3, %s3197_s22  ;;  %v3654_v3 = vld [vmem:[#allocation2 + $0x170] sm:$0xff] }
  0x8f   : > { %2673 = vrot.lane.b32.xlu1 %v3498_v7, %s3197_s22 }
  0x91   : > { %2683 = vrot.lane.b32.xlu0 %v3502_v8, %s3197_s22 }
  0x95   : > { %2693 = vrot.lane.b32.xlu2 %v3508_v15, %s3197_s22 }
  0x97   : > { %2688 = vrot.lane.b32.xlu1 %v3510_v21, %s3197_s22  ;;  %v496_v21 = vld [vmem:[#allocation2 + $0x188] sm:$0xff] }
  0x99   : > { %2698 = vrot.lane.b32.xlu0 %v3514_v22, %s3197_s22  ;;  %v495_v22 = vld [vmem:[#allocation2 + $0x180] sm:$0xff] }
  0x9d   : > { %2708 = vrot.lane.b32.xlu2 %v2707_v31, %s3198_s23 }
  0x9f   : > { %2703 = vrot.lane.b32.xlu1 %v3530_v35, %s3197_s22  ;;  %v492_v35 = vld [vmem:[#allocation2 + $0x158] sm:$0xff] }
  0xa1   : > { %2713 = vrot.lane.b32.xlu0 %v3536_v38, %s3198_s23 }
  0xa5   : > { %2723 = vrot.lane.b32.xlu2 %v3548_v49, %s3198_s23  ;;  %v3620_v49 = vld [vmem:[#allocation2 + $0x140] sm:$0xff] }
  0xa7   : > { %2718 = vrot.lane.b32.xlu1 %v3552_v55, %s3198_s23  ;;  %v2569_v63 = vpop.permute.xlu2 %2568 }
  0xa8   : > { %v2571_v0 = vunpack.i.h.bf16 %v2569_v63  ;;  %v2570_v1 = vunpack.i.l.bf16 %v2569_v63 }
  0xa9   : > { %2728 = vrot.lane.b32.xlu0 %v3556_v56, %s3198_s23  ;;  %v3626_v56 = vld [vmem:[#allocation2 + $0x128] sm:$0xff] }
  0xaa   : > { %v3575_v10 = vsel %vm216_vm0, %v471_v43, %v2570_v1  ;;  %v3578_v12 = vsel %vm216_vm0, %v472_v44, %v2571_v0  ;;  %v3596_v43 = vld [vmem:[#allocation2 + $0xe0] sm:$0xff]  ;;  %v3602_v44 = vpack.i.bf16 %v3590_v28, %v3588_v26  ;;  %v485_v1 = vld [vmem:[#allocation2 + $0x108] sm:$0xff]  ;;  %4654 = vst [vmem:[#allocation21_spill] sm:$0xff] %v3626_v56 }
  0xac   : > { %4650 = vst [vmem:[#allocation17_spill] sm:$0xff] %v3602_v44 }
  0xad   : > { %2738 = vrot.lane.b32.xlu2 %v3572_v6, %s3198_s23  ;;  %v486_v6 = vld [vmem:[#allocation2 + $0x110] sm:$0xff] }
  0xaf   : > { %2733 = vrot.lane.b32.xlu1 %v3582_v17, %s3198_s23  ;;  %v2574_v31 = vpop.permute.xlu2 %2573  ;;  %v3618_v17 = vld [vmem:[#allocation2 + $0x138] sm:$0xff] }
  0xb0   : > { %v2576_v37 = vunpack.i.h.bf16 %v2574_v31  ;;  %v2575_v40 = vunpack.i.l.bf16 %v2574_v31  ;;  %v3612_v31 = vpack.i.bf16 %v3596_v43, %v3594_v42  ;;  %v3634_v55 = vpack.i.bf16 %v3620_v49, %v3618_v17 }
  0xb1   : > { %2743 = vrot.lane.b32.xlu0 %v3586_v18, %s3198_s23  ;;  %v3616_v18 = vpack.i.bf16 %v486_v6, %v485_v1 }
  0xb2   : > { %v3605_v63 = vsel %vm216_vm0, %v474_v54, %v2576_v37  ;;  %v3608_v0 = vsel %vm216_vm0, %v473_v53, %v2575_v40  ;;  %4651 = vst [vmem:[#allocation18_spill] sm:$0xff] %v3612_v31  ;;  %v3624_v40 = vld [vmem:[#allocation2 + $0x120] sm:$0xff] }
  0xb3   : > { %4652 = vst [vmem:[#allocation19_spill] sm:$0xff] %v3616_v18  ;;  %v3644_v15 = vpack.i.bf16 %v3626_v56, %v3624_v40 }
  0xb4   : > { %4653 = vst [vmem:[#allocation20_spill] sm:$0xff] %v3624_v40 }
  0xb5   : > { %2753 = vrot.lane.b32.xlu2 %v3602_v44, %s3198_s23  ;;  %v3630_v44 = vpop.permute.xlu0 %2548  ;;  %4655 = vst [vmem:[#allocation22_spill] sm:$0xff] %v3634_v55 }
  0xb6   : > { %4656 = vst [vmem:[#allocation23_spill] sm:$0xff] %v3644_v15 }
  0xb7   : > { %2748 = vrot.lane.b32.xlu1 %v3612_v31, %s3198_s23  ;;  %v2589_v53 = vpop.permute.xlu2 %2588 }
  0xb8   : > { %v2591_v54 = vunpack.i.h.bf16 %v2589_v53  ;;  %v2590_v37 = vunpack.i.l.bf16 %v2589_v53  ;;  %v491_v53 = vld [vmem:[#allocation2 + $0x150] sm:$0xff] }
  0xb9   : > { %2758 = vrot.lane.b32.xlu0 %v3616_v18, %s3198_s23  ;;  %v3648_v18 = vpack.i.bf16 %v492_v35, %v491_v53 }
  0xba   : > { %v3637_v38 = vsel %vm216_vm0, %v480_v14, %v2591_v54  ;;  %v3640_v31 = vsel %vm216_vm0, %v479_v13, %v2590_v37  ;;  %v3652_v37 = vld [vmem:[#allocation2 + $0x168] sm:$0xff] }
  0xbb   : > { %4657 = vst [vmem:[#allocation24_spill] sm:$0xff] %v3648_v18 }
  0xbd   : > { %2768 = vrot.lane.b32.xlu2 %v3634_v55, %s3198_s23  ;;  %v3660_v55 = vpack.i.bf16 %v496_v21, %v495_v22 }
  0xbf   : > { %2763 = vrot.lane.b32.xlu1 %v3644_v15, %s3198_s23  ;;  %v2604_v14 = vpop.permute.xlu2 %2603  ;;  %4658 = vst [vmem:[#allocation25_spill] sm:$0xff] %v3660_v55 }
  0xc0   : > { %v2606_v54 = vunpack.i.h.bf16 %v2604_v14  ;;  %v2605_v13 = vunpack.i.l.bf16 %v2604_v14  ;;  %v3670_v14 = vpack.i.bf16 %v3654_v3, %v3652_v37 }
  0xc1   : > { %2773 = vrot.lane.b32.xlu0 %v3648_v18, %s3198_s23  ;;  %v3658_v8 = vpop.permute.xlu1 %2558 }
  0xc2   : > { %v3663_v40 = vsel %vm216_vm0, %v486_v6, %v2606_v54  ;;  %v3666_v56 = vsel %vm216_vm0, %v485_v1, %v2605_v13  ;;  %4659 = vst [vmem:[#allocation26_spill] sm:$0xff] %v3670_v14 }
  0xc3   : > { %v2554_v15 = vpop.permute.xlu0 %2553 }
  0xc4   : > { %v2555_v7 = vunpack.i.l.bf16 %v2554_v15 }
  0xc5   : > { %2783 = vrot.lane.b32.xlu2 %v3660_v55, %s3198_s23  ;;  %v2556_v55 = vunpack.i.h.bf16 %v2554_v15 }
  0xc7   : > { %2778 = vrot.lane.b32.xlu1 %v3670_v14, %s3198_s23  ;;  %v2619_v18 = vpop.permute.xlu2 %2618 }
  0xc8   : > { %v2621_v21 = vunpack.i.h.bf16 %v2619_v18  ;;  %v2620_v22 = vunpack.i.l.bf16 %v2619_v18 }
  0xc9   : > { %2788 = vrot.lane.b32.xlu0 %v3389_v39, %s3199_s24  ;;  %v3678_v6 = vpop.permute.xlu1 %2563 }
  0xca   : > { %v3681_v1 = vsel %vm216_vm0, %v492_v35, %v2621_v21  ;;  %v3684_v54 = vsel %vm216_vm0, %v491_v53, %v2620_v22  ;;  %v1684_v35 = vsel %vm216_vm0, %v3516_v23, %v2555_v7  ;;  %v1685_v53 = vsel %vm216_vm0, %v3518_v24, %v2556_v55 }
  0xcb   : > { %v3686_v13 = vpop.permute.xlu0 %2578 }
  0xcd   : > { %2798 = vrot.lane.b32.xlu2 %v3401_v51, %s3199_s24 }
  0xcf   : > { %2793 = vrot.lane.b32.xlu1 %v3382_v33, %s3199_s24  ;;  %v2634_v39 = vpop.permute.xlu2 %2633 }
  0xd0   : > { %v2636_v18 = vunpack.i.h.bf16 %v2634_v39  ;;  %v2635_v14 = vunpack.i.l.bf16 %v2634_v39 }
  0xd1   : > { %2803 = vrot.lane.b32.xlu0 %v3375_v27, %s3199_s24  ;;  %v2584_v15 = vpop.permute.xlu1 %2583 }
  0xd2   : > { %v3699_v21 = vsel %vm1714_vm2, %v1684_v35, %v2635_v14  ;;  %v3702_v51 = vsel %vm1714_vm2, %v1685_v53, %v2636_v18  ;;  %v2585_v39 = vunpack.i.l.bf16 %v2584_v15 }
  0xd3   : > { %v3704_v33 = vpop.permute.xlu0 %2593 }
  0xd5   : > { %2813 = vrot.lane.b32.xlu2 %v3408_v57, %s3199_s24  ;;  %v2586_v57 = vunpack.i.h.bf16 %v2584_v15 }
  0xd7   : > { %2808 = vrot.lane.b32.xlu1 %v3396_v45, %s3199_s24  ;;  %v2649_v7 = vpop.permute.xlu2 %2648 }
  0xd8   : > { %v2651_v23 = vunpack.i.h.bf16 %v2649_v7  ;;  %v2650_v24 = vunpack.i.l.bf16 %v2649_v7 }
  0xd9   : > { %2818 = vrot.lane.b32.xlu0 %v3424_v9, %s3199_s24  ;;  %v2599_v27 = vpop.permute.xlu1 %2598 }
  0xda   : > { %v3714_v55 = vsel %vm1714_vm2, %v3578_v12, %v2651_v23  ;;  %v3718_v14 = vsel %vm1714_vm2, %v3575_v10, %v2650_v24  ;;  %v1697_v12 = vsel %vm216_vm0, %v3560_v60, %v2586_v57  ;;  %v1696_v10 = vsel %vm216_vm0, %v3558_v59, %v2585_v39 }
  0xdb   : > { %v3720_v22 = vpop.permute.xlu0 %2608  ;;  %v2601_v23 = vunpack.i.h.bf16 %v2599_v27  ;;  %v2600_v24 = vunpack.i.l.bf16 %v2599_v27  ;;  %v2551_v60 = vunpack.i.h.bf16 %v3630_v44  ;;  %v2550_v57 = vunpack.i.l.bf16 %v3630_v44 }
  0xdc   : > { %v2560_v39 = vunpack.i.l.bf16 %v3658_v8 }
  0xdd   : > { %2828 = vrot.lane.b32.xlu2 %v3430_v11, %s3199_s24 }
  0xdf   : > { %2823 = vrot.lane.b32.xlu1 %v3420_v4, %s3199_s24  ;;  %v2664_v45 = vpop.permute.xlu2 %2663 }
  0xe0   : > { %v2666_v9 = vunpack.i.h.bf16 %v2664_v45  ;;  %v2665_v18 = vunpack.i.l.bf16 %v2664_v45  ;;  %v370_v45 = vld [vmem:[#allocation2 + $0x8] sm:$0xff] }
  0xe1   : > { %2833 = vrot.lane.b32.xlu0 %v3441_v19, %s3199_s24  ;;  %v2614_v35 = vpop.permute.xlu1 %2613 }
  0xe2   : > { %v3733_v53 = vsel %vm1714_vm2, %v1697_v12, %v2666_v9  ;;  %v3736_v11 = vsel %vm1714_vm2, %v1696_v10, %v2665_v18  ;;  %v1702_v12 = vsel %vm216_vm0, %v3588_v26, %v2600_v24  ;;  %v1686_v26 = vsel %vm216_vm0, %v3526_v32, %v2560_v39 }
  0xe3   : > { %v2624_v4 = vpop.permute.xlu0 %2623  ;;  %v2566_v39 = vunpack.i.h.bf16 %v3678_v6 }
  0xe4   : > { %v2626_v15 = vunpack.i.h.bf16 %v2624_v4  ;;  %v2625_v7 = vunpack.i.l.bf16 %v2624_v4 }
  0xe5   : > { %2843 = vrot.lane.b32.xlu2 %v3445_v20, %s3199_s24  ;;  %v369_v20 = vld [vmem:[#allocation2] sm:$0xff] }
  0xe6   : > { %v3742_v59 = vsel %vm216_vm0, %v3654_v3, %v2626_v15  ;;  %v3746_v19 = vsel %vm216_vm0, %v3652_v37, %v2625_v7  ;;  %v2561_v3 = vunpack.i.h.bf16 %v3658_v8  ;;  %v1703_v37 = vsel %vm216_vm0, %v3590_v28, %v2601_v23  ;;  %v527_v7 = vld [vmem:[#allocation2 + $0x181] sm:$0xff]  ;;  %v528_v8 = vld [vmem:[#allocation2 + $0x189] sm:$0xff] }
  0xe7   : > { %2838 = vrot.lane.b32.xlu1 %v3439_v16, %s3199_s24  ;;  %v2679_v27 = vpop.permute.xlu2 %2678  ;;  %v1682_v28 = vsel %vm216_vm0, %v369_v20, %v2550_v57 }
  0xe8   : > { %v2681_v9 = vunpack.i.h.bf16 %v2679_v27  ;;  %v2680_v18 = vunpack.i.l.bf16 %v2679_v27  ;;  %v1683_v27 = vsel %vm216_vm0, %v370_v45, %v2551_v60  ;;  %v2862_v60 = vpack.i.bf16 %v528_v8, %v527_v7 }
  0xe9   : > { %2848 = vrot.lane.b32.xlu0 %v3453_v29, %s3199_s24  ;;  %v2629_v44 = vpop.permute.xlu1 %2628  ;;  %v2565_v45 = vunpack.i.l.bf16 %v3678_v6 }
  0xea   : > { %v2631_v10 = vunpack.i.h.bf16 %v2629_v44  ;;  %v2630_v4 = vunpack.i.l.bf16 %v2629_v44  ;;  %v3761_v16 = vsel %vm1714_vm2, %v1703_v37, %v2681_v9  ;;  %v3764_v15 = vsel %vm1714_vm2, %v1702_v12, %v2680_v18 }
  0xeb   : > { %v2639_v23 = vpop.permute.xlu0 %2638  ;;  %v1687_v18 = vsel %vm216_vm0, %v3528_v34, %v2561_v3  ;;  %v2616_v37 = vunpack.i.h.bf16 %v2614_v35  ;;  %v2615_v12 = vunpack.i.l.bf16 %v2614_v35 }
  0xec   : > { %v1716_v29 = vsel %vm1714_vm2, %v1683_v27, %v2631_v10  ;;  %v1715_v24 = vsel %vm1714_vm2, %v1682_v28, %v2630_v4  ;;  %v2641_v44 = vunpack.i.h.bf16 %v2639_v23  ;;  %v2640_v9 = vunpack.i.l.bf16 %v2639_v23 }
  0xed   : > { %2858 = vrot.lane.b32.xlu2 %v3457_v30, %s3199_s24  ;;  %v1709_v30 = vsel %vm216_vm0, %v3620_v49, %v2616_v37  ;;  %v1708_v3 = vsel %vm216_vm0, %v3618_v17, %v2615_v12  ;;  %v1688_v49 = vsel %vm216_vm0, %v3541_v46, %v2565_v45  ;;  %v2581_v46 = vunpack.i.h.bf16 %v3686_v13 }
  0xee   : > { %v3777_v57 = vsel %vm1714_vm2, %v1687_v18, %v2641_v44  ;;  %v3780_v32 = vsel %vm1714_vm2, %v1686_v26, %v2640_v9  ;;  %v2580_v9 = vunpack.i.l.bf16 %v3686_v13 }
  0xef   : > { %2853 = vrot.lane.b32.xlu1 %v3451_v25, %s3199_s24  ;;  %v2694_v34 = vpop.permute.xlu2 %2693  ;;  %v1689_v25 = vsel %vm216_vm0, %v3543_v48, %v2566_v39  ;;  %v1695_v13 = vsel %vm216_vm0, %v3566_v5, %v2581_v46 }
  0xf0   : > { %v2696_v20 = vunpack.i.h.bf16 %v2694_v34  ;;  %v2695_v35 = vunpack.i.l.bf16 %v2694_v34 }
  0xf1   : > { %2863 = vrot.lane.b32.xlu0 %v2862_v60, %s3199_s24  ;;  %v2644_v10 = vpop.permute.xlu1 %2643 }
  0xf2   : > { %v2646_v4 = vunpack.i.h.bf16 %v2644_v10  ;;  %v2645_v7 = vunpack.i.l.bf16 %v2644_v10  ;;  %v3792_v8 = vsel %vm1714_vm2, %v1709_v30, %v2696_v20  ;;  %v3795_v6 = vsel %vm1714_vm2, %v1708_v3, %v2695_v35 }
  0xf3   : > { %v2654_v27 = vpop.permute.xlu0 %2653 }
  0xf4   : > { %v1721_v17 = vsel %vm1714_vm2, %v1688_v49, %v2645_v7  ;;  %v1722_v28 = vsel %vm1714_vm2, %v1689_v25, %v2646_v4  ;;  %v2656_v26 = vunpack.i.h.bf16 %v2654_v27  ;;  %v2655_v23 = vunpack.i.l.bf16 %v2654_v27 }
  0xf5   : > { %2873 = vrot.lane.b32.xlu2 %v3467_v41, %s3200_s25 }
  0xf6   : > { %v3807_v44 = vsel %vm1714_vm2, %v3605_v63, %v2656_v26  ;;  %v3811_v48 = vsel %vm1714_vm2, %v3608_v0, %v2655_v23 }
  0xf7   : > { %2868 = vrot.lane.b32.xlu1 %v3463_v36, %s3200_s25  ;;  %v2709_v18 = vpop.permute.xlu2 %2708  ;;  %v1694_v36 = vsel %vm216_vm0, %v3564_v2, %v2580_v9  ;;  %v2596_v2 = vunpack.i.h.bf16 %v3704_v33 }
  0xf8   : > { %v2711_v37 = vunpack.i.h.bf16 %v2709_v18  ;;  %v2710_v12 = vunpack.i.l.bf16 %v2709_v18 }
  0xf9   : > { %2878 = vrot.lane.b32.xlu0 %v3474_v50, %s3200_s25  ;;  %v2659_v41 = vpop.permute.xlu1 %2658 }
  0xfa   : > { %v2661_v63 = vunpack.i.h.bf16 %v2659_v41  ;;  %v2660_v60 = vunpack.i.l.bf16 %v2659_v41  ;;  %v3820_v0 = vsel %vm1747_vm3, %v1716_v29, %v2711_v37  ;;  %v3823_v39 = vsel %vm1747_vm3, %v1715_v24, %v2710_v12  ;;  %v4661_v41 = vld [vmem:[#allocation21_spill] sm:$0xff] }
  0xfb   : > { %v2669_v45 = vpop.permute.xlu0 %2668  ;;  %v2595_v24 = vunpack.i.l.bf16 %v3704_v33  ;;  %v1701_v33 = vsel %vm216_vm0, %v3596_v43, %v2596_v2  ;;  %v4664_v2 = vld [vmem:[#allocation3_spill] sm:$0xff] }
  0xfc   : > { %v1727_v34 = vsel %vm1714_vm2, %v1694_v36, %v2660_v60  ;;  %v1728_v50 = vsel %vm1714_vm2, %v1695_v13, %v2661_v63  ;;  %v2671_v20 = vunpack.i.h.bf16 %v2669_v45  ;;  %v2670_v35 = vunpack.i.l.bf16 %v2669_v45  ;;  %v4662_v63 = vld [vmem:[#allocation20_spill] sm:$0xff] }
  0xfd   : > { %2888 = vrot.lane.b32.xlu2 %v3478_v52, %s3200_s25 }
  0xfe   : > { %v3835_v29 = vsel %vm1714_vm2, %v3637_v38, %v2671_v20  ;;  %v3839_v5 = vsel %vm1714_vm2, %v3640_v31, %v2670_v35  ;;  %v4663_v35 = vld [vmem:[#allocation5_spill] sm:$0xff] }
  0xff   : > { %2883 = vrot.lane.b32.xlu1 %v3472_v47, %s3200_s25  ;;  %v2724_v30 = vpop.permute.xlu2 %2723  ;;  %v1700_v47 = vsel %vm216_vm0, %v3594_v42, %v2595_v24  ;;  %v2611_v42 = vunpack.i.h.bf16 %v3720_v22 }
 0x100   : > { %v2726_v3 = vunpack.i.h.bf16 %v2724_v30  ;;  %v2725_v10 = vunpack.i.l.bf16 %v2724_v30 }
 0x101   : > { %2893 = vrot.lane.b32.xlu0 %v3486_v61, %s3200_s25  ;;  %v2674_v52 = vpop.permute.xlu1 %2673 }
 0x102   : > { %v2676_v38 = vunpack.i.h.bf16 %v2674_v52  ;;  %v2675_v4 = vunpack.i.l.bf16 %v2674_v52  ;;  %v3848_v7 = vsel %vm1747_vm3, %v1722_v28, %v2726_v3  ;;  %v3851_v31 = vsel %vm1747_vm3, %v1721_v17, %v2725_v10  ;;  %v4665_v10 = vld [vmem:[#allocation7_spill] sm:$0xff] }
 0x103   : > { %v2684_v25 = vpop.permute.xlu0 %2683  ;;  %v2610_v28 = vunpack.i.l.bf16 %v3720_v22  ;;  %v1707_v22 = vsel %vm216_vm0, %v4661_v41, %v2611_v42  ;;  %v4666_v42 = vld [vmem:[#allocation8_spill] sm:$0xff] }
 0x104   : > { %v1733_v49 = vsel %vm1714_vm2, %v1700_v47, %v2675_v4  ;;  %v1734_v61 = vsel %vm1714_vm2, %v1701_v33, %v2676_v38  ;;  %v2686_v27 = vunpack.i.h.bf16 %v2684_v25  ;;  %v2685_v26 = vunpack.i.l.bf16 %v2684_v25 }
 0x105   : > { %2903 = vrot.lane.b32.xlu2 %v3490_v62, %s3200_s25  ;;  %v4660_v62 = vld [vmem:[#allocation4_spill] sm:$0xff] }
 0x106   : > { %v3863_v17 = vsel %vm1714_vm2, %v3663_v40, %v2686_v27  ;;  %v3867_v43 = vsel %vm1714_vm2, %v3666_v56, %v2685_v26 }
 0x107   : > { %2898 = vrot.lane.b32.xlu1 %v3484_v58, %s3200_s25  ;;  %v2739_v23 = vpop.permute.xlu2 %2738  ;;  %v1706_v58 = vsel %vm216_vm0, %v4662_v63, %v2610_v28 }
 0x108   : > { %v2741_v46 = vunpack.i.h.bf16 %v2739_v23  ;;  %v2740_v9 = vunpack.i.l.bf16 %v2739_v23 }
 0x109   : > { %2908 = vrot.lane.b32.xlu0 %v4660_v62, %s3200_s25  ;;  %v2689_v18 = vpop.permute.xlu1 %2688  ;;  %v4668_v62 = vld [vmem:[#allocation9_spill] sm:$0xff] }
 0x10a   : > { %v2691_v40 = vunpack.i.h.bf16 %v2689_v18  ;;  %v2690_v37 = vunpack.i.l.bf16 %v2689_v18  ;;  %v3876_v12 = vsel %vm1747_vm3, %v1727_v34, %v2740_v9  ;;  %v3879_v56 = vsel %vm1747_vm3, %v1728_v50, %v2741_v46  ;;  %v560_v9 = vld [vmem:[#allocation2 + $0x18a] sm:$0xff] }
 0x10b   : > { %v2699_v60 = vpop.permute.xlu0 %2698 }
 0x10c   : > { %v1739_v13 = vsel %vm1714_vm2, %v1706_v58, %v2690_v37  ;;  %v1740_v36 = vsel %vm1714_vm2, %v1707_v22, %v2691_v40  ;;  %v2701_v45 = vunpack.i.h.bf16 %v2699_v60  ;;  %v2700_v20 = vunpack.i.l.bf16 %v2699_v60 }
 0x10d   : > { %2918 = vrot.lane.b32.xlu2 %v4663_v35, %s3200_s25 }
 0x10e   : > { %v3891_v34 = vsel %vm1714_vm2, %v3681_v1, %v2701_v45  ;;  %v3895_v50 = vsel %vm1714_vm2, %v3684_v54, %v2700_v20  ;;  %v4669_v20 = vld [vmem:[#allocation10_spill] sm:$0xff] }
 0x10f   : > { %2913 = vrot.lane.b32.xlu1 %v4664_v2, %s3200_s25  ;;  %v2754_v24 = vpop.permute.xlu2 %2753  ;;  %v4670_v2 = vld [vmem:[#allocation12_spill] sm:$0xff] }
 0x110   : > { %v2756_v30 = vunpack.i.h.bf16 %v2754_v24  ;;  %v2755_v3 = vunpack.i.l.bf16 %v2754_v24 }
 0x111   : > { %2923 = vrot.lane.b32.xlu0 %v4665_v10, %s3200_s25  ;;  %v2704_v52 = vpop.permute.xlu1 %2703 }
 0x112   : > { %v2706_v38 = vunpack.i.h.bf16 %v2704_v52  ;;  %v2705_v4 = vunpack.i.l.bf16 %v2704_v52  ;;  %v3902_v33 = vsel %vm1747_vm3, %v1733_v49, %v2755_v3  ;;  %v3905_v1 = vsel %vm1747_vm3, %v1734_v61, %v2756_v30  ;;  %v4667_v61 = vld [vmem:[#allocation6_spill] sm:$0xff] }
 0x113   : > { %v2714_v54 = vpop.permute.xlu0 %2713 }
 0x114   : > { %v1745_v47 = vsel %vm1714_vm2, %v3746_v19, %v2705_v4  ;;  %v1746_v25 = vsel %vm1714_vm2, %v3742_v59, %v2706_v38  ;;  %v2716_v27 = vunpack.i.h.bf16 %v2714_v54  ;;  %v2715_v26 = vunpack.i.l.bf16 %v2714_v54  ;;  %v559_v59 = vld [vmem:[#allocation2 + $0x182] sm:$0xff] }
 0x115   : > { %2933 = vrot.lane.b32.xlu2 %v4666_v42, %s3200_s25  ;;  %v3931_v22 = vpack.i.bf16 %v560_v9, %v559_v59 }
 0x116   : > { %v3915_v28 = vsel %vm1747_vm3, %v3699_v21, %v2715_v26  ;;  %v3919_v49 = vsel %vm1747_vm3, %v3702_v51, %v2716_v27  ;;  %v4671_v27 = vld [vmem:[#allocation13_spill] sm:$0xff] }
 0x117   : > { %2928 = vrot.lane.b32.xlu1 %v4667_v61, %s3200_s25  ;;  %v2769_v19 = vpop.permute.xlu2 %2768  ;;  %v4673_v61 = vld [vmem:[#allocation15_spill] sm:$0xff] }
 0x118   : > { %v2771_v23 = vunpack.i.h.bf16 %v2769_v19  ;;  %v2770_v46 = vunpack.i.l.bf16 %v2769_v19 }
 0x119   : > { %2938 = vrot.lane.b32.xlu0 %v4668_v62, %s3200_s25  ;;  %v2719_v18 = vpop.permute.xlu1 %2718 }
 0x11a   : > { %v2721_v40 = vunpack.i.h.bf16 %v2719_v18  ;;  %v2720_v37 = vunpack.i.l.bf16 %v2719_v18  ;;  %v3926_v21 = vsel %vm1747_vm3, %v1739_v13, %v2770_v46  ;;  %v3929_v51 = vsel %vm1747_vm3, %v1740_v36, %v2771_v23 }
 0x11b   : > { %v2729_v41 = vpop.permute.xlu0 %2728 }
 0x11c   : > { %v1752_v63 = vsel %vm1747_vm3, %v3780_v32, %v2720_v37  ;;  %v1753_v58 = vsel %vm1747_vm3, %v3777_v57, %v2721_v40  ;;  %v2731_v60 = vunpack.i.h.bf16 %v2729_v41  ;;  %v2730_v45 = vunpack.i.l.bf16 %v2729_v41  ;;  %v4674_v37 = vld [vmem:[#allocation16_spill] sm:$0xff] }
 0x11d   : > { %2948 = vrot.lane.b32.xlu2 %v4669_v20, %s3201_s26 }
 0x11e   : > { %v3941_v13 = vsel %vm1747_vm3, %v3714_v55, %v2731_v60  ;;  %v3945_v36 = vsel %vm1747_vm3, %v3718_v14, %v2730_v45 }
 0x11f   : > { %2943 = vrot.lane.b32.xlu1 %v3931_v22, %s3200_s25  ;;  %v2784_v32 = vpop.permute.xlu2 %2783 }
 0x120   : > { %v2786_v35 = vunpack.i.h.bf16 %v2784_v32  ;;  %v2785_v57 = vunpack.i.l.bf16 %v2784_v32 }
 0x121   : > { %2953 = vrot.lane.b32.xlu0 %v4670_v2, %s3201_s26  ;;  %v2734_v24 = vpop.permute.xlu1 %2733 }
 0x122   : > { %v2736_v30 = vunpack.i.h.bf16 %v2734_v24  ;;  %v2735_v3 = vunpack.i.l.bf16 %v2734_v24  ;;  %v3952_v10 = vsel %vm1747_vm3, %v1745_v47, %v2785_v57  ;;  %v3955_v55 = vsel %vm1747_vm3, %v1746_v25, %v2786_v35  ;;  %v4672_v25 = vld [vmem:[#allocation11_spill] sm:$0xff] }
 0x123   : > { %v2744_v14 = vpop.permute.xlu0 %2743 }
 0x124   : > { %v1758_v52 = vsel %vm1747_vm3, %v3811_v48, %v2735_v3  ;;  %v1759_v38 = vsel %vm1747_vm3, %v3807_v44, %v2736_v30  ;;  %v2746_v4 = vunpack.i.h.bf16 %v2744_v14  ;;  %v2745_v54 = vunpack.i.l.bf16 %v2744_v14  ;;  %v4677_v14 = vld [vmem:[#allocation19_spill] sm:$0xff] }
 0x125   : > { %2963 = vrot.lane.b32.xlu2 %v4671_v27, %s3201_s26 }
 0x126   : > { %v3965_v26 = vsel %vm1747_vm3, %v3733_v53, %v2746_v4  ;;  %v3969_v47 = vsel %vm1747_vm3, %v3736_v11, %v2745_v54 }
 0x127   : > { %2958 = vrot.lane.b32.xlu1 %v4672_v25, %s3201_s26  ;;  %v2799_v48 = vpop.permute.xlu2 %2798 }
 0x128   : > { %v2801_v42 = vunpack.i.h.bf16 %v2799_v48  ;;  %v2800_v44 = vunpack.i.l.bf16 %v2799_v48 }
 0x129   : > { %2968 = vrot.lane.b32.xlu0 %v4673_v61, %s3201_s26  ;;  %v2749_v19 = vpop.permute.xlu1 %2748 }
 0x12a   : > { %v2751_v23 = vunpack.i.h.bf16 %v2749_v19  ;;  %v2750_v46 = vunpack.i.l.bf16 %v2749_v19  ;;  %v3976_v53 = vsel %vm1780_vm4, %v1752_v63, %v2800_v44  ;;  %v3979_v59 = vsel %vm1780_vm4, %v1753_v58, %v2801_v42  ;;  %v4675_v58 = vld [vmem:[#allocation14_spill] sm:$0xff] }
 0x12b   : > { %v2759_v11 = vpop.permute.xlu0 %2758 }
 0x12c   : > { %v1764_v9 = vsel %vm1747_vm3, %v3839_v5, %v2750_v46  ;;  %v1765_v62 = vsel %vm1747_vm3, %v3835_v29, %v2751_v23  ;;  %v2761_v18 = vunpack.i.h.bf16 %v2759_v11  ;;  %v2760_v40 = vunpack.i.l.bf16 %v2759_v11  ;;  %v4676_v29 = vld [vmem:[#allocation18_spill] sm:$0xff]  ;;  %v4680_v11 = vld [vmem:[#allocation24_spill] sm:$0xff] }
 0x12d   : > { %2978 = vrot.lane.b32.xlu2 %v4674_v37, %s3201_s26 }
 0x12e   : > { %v3989_v41 = vsel %vm1747_vm3, %v3761_v16, %v2761_v18  ;;  %v3993_v63 = vsel %vm1747_vm3, %v3764_v15, %v2760_v40  ;;  %v593_v40 = vld [vmem:[#allocation2 + $0x1a0] sm:$0xff] }
 0x12f   : > { %2973 = vrot.lane.b32.xlu1 %v4675_v58, %s3201_s26  ;;  %v2814_v5 = vpop.permute.xlu2 %2813 }
 0x130   : > { %v2816_v60 = vunpack.i.h.bf16 %v2814_v5  ;;  %v2815_v45 = vunpack.i.l.bf16 %v2814_v5  ;;  %v4682_v5 = vld [vmem:[#allocation26_spill] sm:$0xff] }
 0x131   : > { %2983 = vrot.lane.b32.xlu0 %v4676_v29, %s3201_s26  ;;  %v2764_v20 = vpop.permute.xlu1 %2763 }
 0x132   : > { %v2766_v32 = vunpack.i.h.bf16 %v2764_v20  ;;  %v2765_v35 = vunpack.i.l.bf16 %v2764_v20  ;;  %v4000_v57 = vsel %vm1780_vm4, %v1758_v52, %v2815_v45  ;;  %v4003_v16 = vsel %vm1780_vm4, %v1759_v38, %v2816_v60  ;;  %v4678_v38 = vld [vmem:[#allocation17_spill] sm:$0xff] }
 0x133   : > { %v2774_v15 = vpop.permute.xlu0 %2773 }
 0x134   : > { %v1770_v2 = vsel %vm1747_vm3, %v3867_v43, %v2765_v35  ;;  %v1771_v24 = vsel %vm1747_vm3, %v3863_v17, %v2766_v32  ;;  %v2776_v30 = vunpack.i.h.bf16 %v2774_v15  ;;  %v2775_v3 = vunpack.i.l.bf16 %v2774_v15  ;;  %v4679_v17 = vld [vmem:[#allocation23_spill] sm:$0xff]  ;;  %v595_v35 = vld [vmem:[#allocation2 + $0x39] sm:$0xff] }
 0x135   : > { %2993 = vrot.lane.b32.xlu2 %v4677_v14, %s3201_s26  ;;  %v594_v32 = vld [vmem:[#allocation2 + $0x31] sm:$0xff] }
 0x136   : > { %v4013_v4 = vsel %vm1747_vm3, %v3792_v8, %v2776_v30  ;;  %v4017_v52 = vsel %vm1747_vm3, %v3795_v6, %v2775_v3 }
 0x137   : > { %2988 = vrot.lane.b32.xlu1 %v4678_v38, %s3201_s26  ;;  %v2829_v43 = vpop.permute.xlu2 %2828 }
 0x138   : > { %v2831_v54 = vunpack.i.h.bf16 %v2829_v43  ;;  %v2830_v27 = vunpack.i.l.bf16 %v2829_v43  ;;  %v3027_v43 = vpack.i.bf16 %v595_v35, %v594_v32  ;;  %v602_v35 = vld [vmem:[#allocation2 + $0x91] sm:$0xff] }
 0x139   : > { %2998 = vrot.lane.b32.xlu0 %v4679_v17, %s3201_s26  ;;  %v2779_v25 = vpop.permute.xlu1 %2778 }
 0x13a   : > { %v2781_v48 = vunpack.i.h.bf16 %v2779_v25  ;;  %v2780_v42 = vunpack.i.l.bf16 %v2779_v25  ;;  %v4024_v44 = vsel %vm1780_vm4, %v1764_v9, %v2830_v27  ;;  %v4027_v8 = vsel %vm1780_vm4, %v1765_v62, %v2831_v54  ;;  %v592_v62 = vld [vmem:[#allocation2 + $0x198] sm:$0xff] }
 0x13b   : > { %v2789_v6 = vpop.permute.xlu0 %2788  ;;  %v3022_v45 = vpack.i.bf16 %v593_v40, %v592_v62  ;;  %v626_v54 = vld [vmem:[#allocation2 + $0x32] sm:$0xff]  ;;  %v627_v27 = vld [vmem:[#allocation2 + $0x3a] sm:$0xff]  ;;  %v599_v40 = vld [vmem:[#allocation2 + $0x69] sm:$0xff] }
 0x13c   : > { %v1776_v61 = vsel %vm1747_vm3, %v3895_v50, %v2780_v42  ;;  %v1777_v19 = vsel %vm1747_vm3, %v3891_v34, %v2781_v48  ;;  %v2791_v23 = vunpack.i.h.bf16 %v2789_v6  ;;  %v2790_v46 = vunpack.i.l.bf16 %v2789_v6  ;;  %v4681_v50 = vld [vmem:[#allocation22_spill] sm:$0xff]  ;;  %v597_v42 = vld [vmem:[#allocation2 + $0x51] sm:$0xff] }
 0x13d   : > { %3008 = vrot.lane.b32.xlu2 %v4680_v11, %s3201_s26  ;;  %v596_v48 = vld [vmem:[#allocation2 + $0x49] sm:$0xff]  ;;  %v598_v62 = vld [vmem:[#allocation2 + $0x61] sm:$0xff] }
 0x13e   : > { %v4037_v18 = vsel %vm1780_vm4, %v3820_v0, %v2791_v23  ;;  %v4041_v9 = vsel %vm1780_vm4, %v3823_v39, %v2790_v46 }
 0x13f   : > { %3003 = vrot.lane.b32.xlu1 %v4681_v50, %s3201_s26  ;;  %v2844_v37 = vpop.permute.xlu2 %2843 }
 0x140   : > { %v2846_v34 = vunpack.i.h.bf16 %v2844_v37  ;;  %v2845_v58 = vunpack.i.l.bf16 %v2844_v37  ;;  %v3032_v37 = vpack.i.bf16 %v597_v42, %v596_v48 }
 0x141   : > { %3013 = vrot.lane.b32.xlu0 %v4682_v5, %s3201_s26  ;;  %v2794_v60 = vpop.permute.xlu1 %2793 }
 0x142   : > { %v2796_v29 = vunpack.i.h.bf16 %v2794_v60  ;;  %v2795_v0 = vunpack.i.l.bf16 %v2794_v60  ;;  %v4048_v20 = vsel %vm1780_vm4, %v1770_v2, %v2845_v58  ;;  %v4051_v39 = vsel %vm1780_vm4, %v1771_v24, %v2846_v34 }
 0x143   : > { %v2804_v15 = vpop.permute.xlu0 %2803 }
 0x144   : > { %v1783_v30 = vsel %vm1780_vm4, %v3915_v28, %v2795_v0  ;;  %v1784_v3 = vsel %vm1780_vm4, %v3919_v49, %v2796_v29  ;;  %v2806_v14 = vunpack.i.h.bf16 %v2804_v15  ;;  %v2805_v38 = vunpack.i.l.bf16 %v2804_v15  ;;  %v4683_v28 = vld [vmem:[#allocation25_spill] sm:$0xff]  ;;  %v628_v29 = vld [vmem:[#allocation2 + $0x4a] sm:$0xff]  ;;  %v629_v0 = vld [vmem:[#allocation2 + $0x52] sm:$0xff] }
 0x145   : > { %3023 = vrot.lane.b32.xlu2 %v3022_v45, %s3201_s26  ;;  %v603_v15 = vld [vmem:[#allocation2 + $0x99] sm:$0xff] }
 0x146   : > { %v4060_v2 = vsel %vm1780_vm4, %v3848_v7, %v2806_v14  ;;  %v4064_v24 = vsel %vm1780_vm4, %v3851_v31, %v2805_v38  ;;  %v3037_v7 = vpack.i.bf16 %v627_v27, %v626_v54  ;;  %v3052_v38 = vpack.i.bf16 %v629_v0, %v628_v29  ;;  %v634_v27 = vld [vmem:[#allocation2 + $0x92] sm:$0xff]  ;;  %v604_v29 = vld [vmem:[#allocation2 + $0xa9] sm:$0xff] }
 0x147   : > { %3018 = vrot.lane.b32.xlu1 %v4683_v28, %s3201_s26  ;;  %v2859_v17 = vpop.permute.xlu2 %2858  ;;  %v635_v28 = vld [vmem:[#allocation2 + $0x9a] sm:$0xff]  ;;  %v605_v0 = vld [vmem:[#allocation2 + $0xb1] sm:$0xff] }
 0x148   : > { %v2861_v49 = vunpack.i.h.bf16 %v2859_v17  ;;  %v2860_v25 = vunpack.i.l.bf16 %v2859_v17 }
 0x149   : > { %3028 = vrot.lane.b32.xlu0 %v3027_v43, %s3202_s27  ;;  %v2809_v6 = vpop.permute.xlu1 %2808 }
 0x14a   : > { %v2811_v23 = vunpack.i.h.bf16 %v2809_v6  ;;  %v2810_v46 = vunpack.i.l.bf16 %v2809_v6  ;;  %v4070_v31 = vsel %vm1780_vm4, %v1776_v61, %v2860_v25  ;;  %v4073_v11 = vsel %vm1780_vm4, %v1777_v19, %v2861_v49 }
 0x14b   : > { %v2819_v50 = vpop.permute.xlu0 %2818  ;;  %v3042_v61 = vpack.i.bf16 %v599_v40, %v598_v62  ;;  %v3047_v49 = vpack.i.bf16 %v603_v15, %v602_v35  ;;  %v610_v40 = vld [vmem:[#allocation2 + $0xf1] sm:$0xff] }
 0x14c   : > { %v1789_v34 = vsel %vm1780_vm4, %v3945_v36, %v2810_v46  ;;  %v1790_v58 = vsel %vm1780_vm4, %v3941_v13, %v2811_v23  ;;  %v2821_v5 = vunpack.i.h.bf16 %v2819_v50  ;;  %v2820_v60 = vunpack.i.l.bf16 %v2819_v50  ;;  %v642_v23 = vld [vmem:[#allocation2 + $0xf2] sm:$0xff]  ;;  %v643_v46 = vld [vmem:[#allocation2 + $0xfa] sm:$0xff] }
 0x14d   : > { %3038 = vrot.lane.b32.xlu2 %v3037_v7, %s3203_s28  ;;  %v3057_v7 = vpack.i.bf16 %v635_v28, %v634_v27  ;;  %v611_v50 = vld [vmem:[#allocation2 + $0xf9] sm:$0xff]  ;;  %v630_v28 = vld [vmem:[#allocation2 + $0x62] sm:$0xff] }
 0x14e   : > { %v4082_v19 = vsel %vm1780_vm4, %v3876_v12, %v2820_v60  ;;  %v4086_v45 = vsel %vm1780_vm4, %v3879_v56, %v2821_v5  ;;  %v3067_v5 = vpack.i.bf16 %v643_v46, %v642_v23  ;;  %v612_v23 = vld [vmem:[#allocation2 + $0x109] sm:$0xff]  ;;  %v613_v46 = vld [vmem:[#allocation2 + $0x111] sm:$0xff] }
 0x14f   : > { %3033 = vrot.lane.b32.xlu1 %v3032_v37, %s3202_s27  ;;  %v2874_v13 = vpop.permute.xlu2 %2873 }
 0x150   : > { %v2876_v36 = vunpack.i.h.bf16 %v2874_v13  ;;  %v2875_v32 = vunpack.i.l.bf16 %v2874_v13 }
 0x151   : > { %3043 = vrot.lane.b32.xlu0 %v3042_v61, %s3202_s27  ;;  %v2824_v14 = vpop.permute.xlu1 %2823 }
 0x152   : > { %v2826_v12 = vunpack.i.h.bf16 %v2824_v14  ;;  %v2825_v43 = vunpack.i.l.bf16 %v2824_v14  ;;  %v4091_v54 = vsel %vm1813_vm5, %v1783_v30, %v2875_v32  ;;  %v4094_v56 = vsel %vm1813_vm5, %v1784_v3, %v2876_v36 }
 0x153   : > { %v2834_v17 = vpop.permute.xlu0 %2833  ;;  %v3062_v36 = vpack.i.bf16 %v611_v50, %v610_v40 }
 0x154   : > { %v1795_v25 = vsel %vm1780_vm4, %v3969_v47, %v2825_v43  ;;  %v1796_v48 = vsel %vm1780_vm4, %v3965_v26, %v2826_v12  ;;  %v2836_v42 = vunpack.i.h.bf16 %v2834_v17  ;;  %v2835_v6 = vunpack.i.l.bf16 %v2834_v17  ;;  %v636_v12 = vld [vmem:[#allocation2 + $0xaa] sm:$0xff]  ;;  %v637_v43 = vld [vmem:[#allocation2 + $0xb2] sm:$0xff] }
 0x155   : > { %3053 = vrot.lane.b32.xlu2 %v3052_v38, %s3203_s28  ;;  %v3072_v38 = vpack.i.bf16 %v605_v0, %v604_v29  ;;  %v631_v17 = vld [vmem:[#allocation2 + $0x6a] sm:$0xff] }
 0x156   : > { %v4103_v30 = vsel %vm1780_vm4, %v3902_v33, %v2835_v6  ;;  %v4107_v3 = vsel %vm1780_vm4, %v3905_v1, %v2836_v42  ;;  %v3082_v42 = vpack.i.bf16 %v637_v43, %v636_v12  ;;  %v644_v0 = vld [vmem:[#allocation2 + $0x10a] sm:$0xff]  ;;  %v650_v12 = vld [vmem:[#allocation2 + $0x152] sm:$0xff]  ;;  %v651_v43 = vld [vmem:[#allocation2 + $0x15a] sm:$0xff] }
 0x157   : > { %3048 = vrot.lane.b32.xlu1 %v3047_v49, %s3202_s27  ;;  %v2889_v47 = vpop.permute.xlu2 %2888 }
 0x158   : > { %v2891_v62 = vunpack.i.h.bf16 %v2889_v47  ;;  %v2890_v26 = vunpack.i.l.bf16 %v2889_v47 }
 0x159   : > { %3058 = vrot.lane.b32.xlu0 %v3057_v7, %s3203_s28  ;;  %v2839_v37 = vpop.permute.xlu1 %2838 }
 0x15a   : > { %v2841_v60 = vunpack.i.h.bf16 %v2839_v37  ;;  %v2840_v33 = vunpack.i.l.bf16 %v2839_v37  ;;  %v4112_v61 = vsel %vm1813_vm5, %v1789_v34, %v2890_v26  ;;  %v4115_v1 = vsel %vm1813_vm5, %v1790_v58, %v2891_v62 }
 0x15b   : > { %v2849_v13 = vpop.permute.xlu0 %2848  ;;  %v3077_v62 = vpack.i.bf16 %v631_v17, %v630_v28 }
 0x15c   : > { %v1801_v32 = vsel %vm1780_vm4, %v3993_v63, %v2840_v33  ;;  %v1802_v35 = vsel %vm1780_vm4, %v3989_v41, %v2841_v60  ;;  %v2851_v15 = vunpack.i.h.bf16 %v2849_v13  ;;  %v2850_v14 = vunpack.i.l.bf16 %v2849_v13  ;;  %v618_v60 = vld [vmem:[#allocation2 + $0x151] sm:$0xff]  ;;  %v619_v33 = vld [vmem:[#allocation2 + $0x159] sm:$0xff] }
 0x15d   : > { %3068 = vrot.lane.b32.xlu2 %v3067_v5, %s3203_s28  ;;  %v3087_v5 = vpack.i.bf16 %v613_v46, %v612_v23  ;;  %v645_v13 = vld [vmem:[#allocation2 + $0x112] sm:$0xff] }
 0x15e   : > { %v4124_v34 = vsel %vm1780_vm4, %v3926_v21, %v2850_v14  ;;  %v4128_v58 = vsel %vm1780_vm4, %v3929_v51, %v2851_v15  ;;  %v3097_v15 = vpack.i.bf16 %v619_v33, %v618_v60  ;;  %v600_v46 = vld [vmem:[#allocation2 + $0x79] sm:$0xff]  ;;  %v633_v33 = vld [vmem:[#allocation2 + $0x82] sm:$0xff] }
 0x15f   : > { %3063 = vrot.lane.b32.xlu1 %v3062_v36, %s3202_s27  ;;  %v2904_v63 = vpop.permute.xlu2 %2903  ;;  %v632_v60 = vld [vmem:[#allocation2 + $0x7a] sm:$0xff] }
 0x160   : > { %v2906_v27 = vunpack.i.h.bf16 %v2904_v63  ;;  %v2905_v41 = vunpack.i.l.bf16 %v2904_v63 }
 0x161   : > { %3073 = vrot.lane.b32.xlu0 %v3072_v38, %s3202_s27  ;;  %v2854_v49 = vpop.permute.xlu1 %2853 }
 0x162   : > { %v2856_v6 = vunpack.i.h.bf16 %v2854_v49  ;;  %v2855_v21 = vunpack.i.l.bf16 %v2854_v49  ;;  %v4133_v7 = vsel %vm1813_vm5, %v1795_v25, %v2905_v41  ;;  %v4136_v51 = vsel %vm1813_vm5, %v1796_v48, %v2906_v27 }
 0x163   : > { %v2864_v47 = vpop.permute.xlu0 %2863  ;;  %v3092_v27 = vpack.i.bf16 %v645_v13, %v644_v0 }
 0x164   : > { %v1807_v26 = vsel %vm1780_vm4, %v4017_v52, %v2855_v21  ;;  %v1808_v40 = vsel %vm1780_vm4, %v4013_v4, %v2856_v6  ;;  %v2866_v50 = vunpack.i.h.bf16 %v2864_v47  ;;  %v2865_v37 = vunpack.i.l.bf16 %v2864_v47  ;;  %v606_v6 = vld [vmem:[#allocation2 + $0xc1] sm:$0xff] }
 0x165   : > { %3083 = vrot.lane.b32.xlu2 %v3082_v42, %s3203_s28  ;;  %v601_v47 = vld [vmem:[#allocation2 + $0x81] sm:$0xff] }
 0x166   : > { %v4145_v25 = vsel %vm1780_vm4, %v3952_v10, %v2865_v37  ;;  %v4149_v48 = vsel %vm1780_vm4, %v3955_v55, %v2866_v50 }
 0x167   : > { %3078 = vrot.lane.b32.xlu1 %v3077_v62, %s3203_s28  ;;  %v2919_v52 = vpop.permute.xlu2 %2918 }
 0x168   : > { %v2921_v29 = vunpack.i.h.bf16 %v2919_v52  ;;  %v2920_v4 = vunpack.i.l.bf16 %v2919_v52 }
 0x169   : > { %3088 = vrot.lane.b32.xlu0 %v3087_v5, %s3202_s27  ;;  %v2869_v36 = vpop.permute.xlu1 %2868 }
 0x16a   : > { %v2871_v14 = vunpack.i.h.bf16 %v2869_v36  ;;  %v2870_v10 = vunpack.i.l.bf16 %v2869_v36  ;;  %v4154_v38 = vsel %vm1813_vm5, %v1801_v32, %v2920_v4  ;;  %v4157_v55 = vsel %vm1813_vm5, %v1802_v35, %v2921_v29 }
 0x16b   : > { %v2879_v63 = vpop.permute.xlu0 %2878  ;;  %v3102_v32 = vpack.i.bf16 %v651_v43, %v650_v12  ;;  %v3107_v29 = vpack.i.bf16 %v601_v47, %v600_v46  ;;  %v639_v12 = vld [vmem:[#allocation2 + $0xca] sm:$0xff] }
 0x16c   : > { %v4161_v41 = vsel %vm1813_vm5, %v4041_v9, %v2870_v10  ;;  %v4165_v28 = vsel %vm1813_vm5, %v4037_v18, %v2871_v14  ;;  %v2881_v17 = vunpack.i.h.bf16 %v2879_v63  ;;  %v2880_v49 = vunpack.i.l.bf16 %v2879_v63  ;;  %v607_v9 = vld [vmem:[#allocation2 + $0xc9] sm:$0xff]  ;;  %v614_v14 = vld [vmem:[#allocation2 + $0x121] sm:$0xff] }
 0x16d   : > { %3098 = vrot.lane.b32.xlu2 %v3097_v15, %s3202_s27  ;;  %v3112_v50 = vpack.i.bf16 %v607_v9, %v606_v6  ;;  %v3117_v15 = vpack.i.bf16 %v633_v33, %v632_v60  ;;  %v615_v10 = vld [vmem:[#allocation2 + $0x129] sm:$0xff]  ;;  %v621_v60 = vld [vmem:[#allocation2 + $0x171] sm:$0xff] }
 0x16e   : > { %v4170_v35 = vsel %vm1813_vm5, %v3976_v53, %v2880_v49  ;;  %v4174_v42 = vsel %vm1813_vm5, %v3979_v59, %v2881_v17  ;;  %v3127_v63 = vpack.i.bf16 %v615_v10, %v614_v14  ;;  %v647_v49 = vld [vmem:[#allocation2 + $0x12a] sm:$0xff] }
 0x16f   : > { %3093 = vrot.lane.b32.xlu1 %v3092_v27, %s3203_s28  ;;  %v2934_v21 = vpop.permute.xlu2 %2933 }
 0x170   : > { %v2936_v18 = vunpack.i.h.bf16 %v2934_v21  ;;  %v2935_v23 = vunpack.i.l.bf16 %v2934_v21 }
 0x171   : > { %3103 = vrot.lane.b32.xlu0 %v3102_v32, %s3203_s28  ;;  %v2884_v62 = vpop.permute.xlu1 %2883 }
 0x172   : > { %v2886_v37 = vunpack.i.h.bf16 %v2884_v62  ;;  %v2885_v53 = vunpack.i.l.bf16 %v2884_v62  ;;  %v4179_v5 = vsel %vm1813_vm5, %v1807_v26, %v2935_v23  ;;  %v4182_v59 = vsel %vm1813_vm5, %v1808_v40, %v2936_v18  ;;  %v652_v62 = vld [vmem:[#allocation2 + $0x16a] sm:$0xff] }
 0x173   : > { %v2894_v52 = vpop.permute.xlu0 %2893 }
 0x174   : > { %v1820_v4 = vsel %vm1813_vm5, %v4064_v24, %v2885_v53  ;;  %v1821_v0 = vsel %vm1813_vm5, %v4060_v2, %v2886_v37  ;;  %v2896_v13 = vunpack.i.h.bf16 %v2894_v52  ;;  %v2895_v36 = vunpack.i.l.bf16 %v2894_v52  ;;  %v638_v2 = vld [vmem:[#allocation2 + $0xc2] sm:$0xff] }
 0x175   : > { %3113 = vrot.lane.b32.xlu2 %v3112_v50, %s3202_s27  ;;  %v3122_v6 = vpack.i.bf16 %v639_v12, %v638_v2  ;;  %v653_v50 = vld [vmem:[#allocation2 + $0x172] sm:$0xff]  ;;  %v620_v53 = vld [vmem:[#allocation2 + $0x169] sm:$0xff] }
 0x176   : > { %v4191_v26 = vsel %vm1813_vm5, %v4000_v57, %v2895_v36  ;;  %v4195_v40 = vsel %vm1813_vm5, %v4003_v16, %v2896_v13  ;;  %v646_v57 = vld [vmem:[#allocation2 + $0x122] sm:$0xff]  ;;  %v3142_v52 = vpack.i.bf16 %v653_v50, %v652_v62  ;;  %v608_v36 = vld [vmem:[#allocation2 + $0xd9] sm:$0xff]  ;;  %v3137_v10 = vpack.i.bf16 %v621_v60, %v620_v53 }
 0x177   : > { %3108 = vrot.lane.b32.xlu1 %v3107_v29, %s3202_s27  ;;  %v4198_v24 = vpop.permute.xlu2 %2948  ;;  %v3132_v23 = vpack.i.bf16 %v647_v49, %v646_v57  ;;  %v648_v50 = vld [vmem:[#allocation2 + $0x13a] sm:$0xff] }
 0x179   : > { %3118 = vrot.lane.b32.xlu0 %v3117_v15, %s3203_s28  ;;  %v2899_v43 = vpop.permute.xlu1 %2898  ;;  %v609_v15 = vld [vmem:[#allocation2 + $0xe1] sm:$0xff] }
 0x17a   : > { %v2901_v27 = vunpack.i.h.bf16 %v2899_v43  ;;  %v2900_v17 = vunpack.i.l.bf16 %v2899_v43 }
 0x17b   : > { %v2909_v32 = vpop.permute.xlu0 %2908 }
 0x17c   : > { %v1826_v16 = vsel %vm1813_vm5, %v4082_v19, %v2900_v17  ;;  %v1827_v9 = vsel %vm1813_vm5, %v4086_v45, %v2901_v27  ;;  %v2911_v21 = vunpack.i.h.bf16 %v2909_v32  ;;  %v2910_v18 = vunpack.i.l.bf16 %v2909_v32  ;;  %v616_v17 = vld [vmem:[#allocation2 + $0x139] sm:$0xff] }
 0x17d   : > { %3128 = vrot.lane.b32.xlu2 %v3127_v63, %s3202_s27  ;;  %v640_v32 = vld [vmem:[#allocation2 + $0xda] sm:$0xff] }
 0x17e   : > { %v4208_v46 = vsel %vm1813_vm5, %v4024_v44, %v2910_v18  ;;  %v4212_v47 = vsel %vm1813_vm5, %v4027_v8, %v2911_v21 }
 0x17f   : > { %3123 = vrot.lane.b32.xlu1 %v3122_v6, %s3203_s28  ;;  %v2964_v19 = vpop.permute.xlu2 %2963  ;;  %v641_v6 = vld [vmem:[#allocation2 + $0xe2] sm:$0xff] }
 0x180   : > { %v2966_v37 = vunpack.i.h.bf16 %v2964_v19  ;;  %v2965_v45 = vunpack.i.l.bf16 %v2964_v19  ;;  %v649_v19 = vld [vmem:[#allocation2 + $0x142] sm:$0xff] }
 0x181   : > { %3133 = vrot.lane.b32.xlu0 %v3132_v23, %s3203_s28  ;;  %v2914_v33 = vpop.permute.xlu1 %2913 }
 0x182   : > { %v2916_v44 = vunpack.i.h.bf16 %v2914_v33  ;;  %v2915_v29 = vunpack.i.l.bf16 %v2914_v33  ;;  %v4217_v13 = vsel %vm1846_vm6, %v1820_v4, %v2965_v45  ;;  %v4220_v8 = vsel %vm1846_vm6, %v1821_v0, %v2966_v37 }
 0x183   : > { %v2924_v14 = vpop.permute.xlu0 %2923  ;;  %v3147_v4 = vpack.i.bf16 %v609_v15, %v608_v36  ;;  %v3152_v45 = vpack.i.bf16 %v641_v6, %v640_v32  ;;  %v1965_v15 = vld [vmem:[%s4608_s1 + $0x10] sm:$0x3]  ;;  %v656_v6 = vld [vmem:[#allocation2 + $0x19a] sm:$0xff] }
 0x184   : > { %v4224_v2 = vsel %vm1813_vm5, %v4103_v30, %v2915_v29  ;;  %v4228_v12 = vsel %vm1813_vm5, %v4107_v3, %v2916_v44  ;;  %v2926_v43 = vunpack.i.h.bf16 %v2924_v14  ;;  %v2925_v63 = vunpack.i.l.bf16 %v2924_v14  ;;  %v617_v30 = vld [vmem:[#allocation2 + $0x141] sm:$0xff] }
 0x185   : > { %3143 = vrot.lane.b32.xlu2 %v3142_v52, %s3203_s28  ;;  %v3157_v18 = vpack.i.bf16 %v617_v30, %v616_v17  ;;  %v622_v29 = vld [vmem:[#allocation2 + $0x181] sm:$0xff] }
 0x186   : > { %v4233_v0 = vsel %vm1813_vm5, %v4048_v20, %v2925_v63  ;;  %v4237_v27 = vsel %vm1813_vm5, %v4051_v39, %v2926_v43  ;;  %v625_v43 = vld [vmem:[#allocation2 + $0x1a1] sm:$0xff] }
 0x187   : > { %3138 = vrot.lane.b32.xlu1 %v3137_v10, %s3202_s27  ;;  %v2979_v57 = vpop.permute.xlu2 %2978  ;;  %v624_v10 = vld [vmem:[#allocation2 + $0x199] sm:$0xff] }
 0x188   : > { %v2981_v3 = vunpack.i.h.bf16 %v2979_v57  ;;  %v2980_v49 = vunpack.i.l.bf16 %v2979_v57  ;;  %v3177_v57 = vpack.i.bf16 %v625_v43, %v624_v10 }
 0x189   : > { %3148 = vrot.lane.b32.xlu0 %v3147_v4, %s3202_s27  ;;  %v2929_v21 = vpop.permute.xlu1 %2928  ;;  %v1975_v4 = vunpack.c.l.b16 %v1965_v15 }
 0x18a   : > { %v2931_v23 = vunpack.i.h.bf16 %v2929_v21  ;;  %v2930_v20 = vunpack.i.l.bf16 %v2929_v21  ;;  %v4242_v62 = vsel %vm1846_vm6, %v1826_v16, %v2980_v49  ;;  %v4245_v39 = vsel %vm1846_vm6, %v1827_v9, %v2981_v3  ;;  %v657_v21 = vld [vmem:[#allocation2 + $0x1a2] sm:$0xff] }
 0x18b   : > { %v2939_v37 = vpop.permute.xlu0 %2938  ;;  %v3162_v16 = vpack.i.bf16 %v649_v19, %v648_v50  ;;  %v1978_v3 = vpack.c.b16 %v1975_v4, %v1975_v4 }
 0x18c   : > { %v4249_v53 = vsel %vm1813_vm5, %v4124_v34, %v2930_v20  ;;  %v4253_v60 = vsel %vm1813_vm5, %v4128_v58, %v2931_v23  ;;  %v2941_v33 = vunpack.i.h.bf16 %v2939_v37  ;;  %v2940_v52 = vunpack.i.l.bf16 %v2939_v37  ;;  %v623_v58 = vld [vmem:[#allocation2 + $0x189] sm:$0xff]  ;;  %v2440_v37 = vld [vmem:[%s4608_s1] sm:$0xff] }
 0x18d   : > { %3158 = vrot.lane.b32.xlu2 %v3157_v18, %s3202_s27  ;;  %v2032_v32 = vsel %vm2030_vm7, %v1978_v3, 0  ;;  %v3182_v20 = vpack.i.bf16 %v657_v21, %v656_v6 }
 0x18e   : > { %v4258_v9 = vsel %vm1813_vm5, %v4070_v31, %v2940_v52  ;;  %v4262_v44 = vsel %vm1813_vm5, %v4073_v11, %v2941_v33  ;;  %v3167_v11 = vpack.i.bf16 %v623_v58, %v622_v29  ;;  %2039 = vmatpush.bf16.msra.mxu0 %v2032_v32  ;;  %2521 = vmatpush.bf16.msra.mxu1 %v2032_v32 }
 0x18f   : > { %3153 = vrot.lane.b32.xlu1 %v3152_v45, %s3203_s28  ;;  %v4265_v34 = vpop.permute.xlu2 %2993  ;;  %2522 = vmatpush.bf16.msra.mxu2 %v2032_v32 }
 0x190   : > { %2523 = vmatpush.bf16.msra.mxu3 %v2032_v32 }
 0x191   : > { %3163 = vrot.lane.b32.xlu0 %v3162_v16, %s3203_s28  ;;  %v2944_v36 = vpop.permute.xlu1 %2943 }
 0x192   : > { %v2946_v14 = vunpack.i.h.bf16 %v2944_v36  ;;  %v2945_v31 = vunpack.i.l.bf16 %v2944_v36 }
 0x193   : > { %v4271_v63 = vpop.permute.xlu0 %2953 }
 0x194   : > { %v1844_v17 = vsel %vm1813_vm5, %v4145_v25, %v2945_v31  ;;  %v1845_v30 = vsel %vm1813_vm5, %v4149_v48, %v2946_v14  ;;  %v2441_v25 = vld [vmem:[%s4608_s1 + $0x8] sm:$0xff] }
 0x195   : > { %3173 = vrot.lane.b32.xlu2 %v3931_v22, %s3203_s28  ;;  %2040 = vmatpush.bf16.msra.mxu0 %v2441_v25 }
 0x196   : > { %2524 = vmatpush.bf16.msra.mxu1 %v2441_v25  ;;  %2525 = vmatpush.bf16.msra.mxu2 %v2441_v25 }
 0x197   : > { %3168 = vrot.lane.b32.xlu1 %v3167_v11, %s3202_s27  ;;  %v4280_v49 = vpop.permute.xlu2 %3008  ;;  %2526 = vmatpush.bf16.msra.mxu3 %v2441_v25 }
 0x199   : > { %3178 = vrot.lane.b32.xlu0 %v3177_v57, %s3202_s27  ;;  %v2959_v48 = vpop.permute.xlu1 %2958  ;;  %2041 = vmatpush.bf16.msra.mxu0 %v2440_v37 }
 0x19a   : > { %v2961_v22 = vunpack.i.h.bf16 %v2959_v48  ;;  %v2960_v18 = vunpack.i.l.bf16 %v2959_v48  ;;  %2527 = vmatpush.bf16.msra.mxu1 %v2440_v37  ;;  %2528 = vmatpush.bf16.msra.mxu2 %v2440_v37 }
 0x19b   : > { %v4286_v23 = vpop.permute.xlu0 %2968  ;;  %2529 = vmatpush.bf16.msra.mxu3 %v2440_v37 }
 0x19c   : > { %v4290_v50 = vsel %vm1846_vm6, %v4170_v35, %v2960_v18  ;;  %v4294_v19 = vsel %vm1846_vm6, %v4174_v42, %v2961_v22  ;;  %v2951_v22 = vunpack.i.h.bf16 %v4198_v24 }
 0x19f   : > { %3183 = vrot.lane.b32.xlu1 %v3182_v20, %s3203_s28  ;;  %v3024_v45 = vpop.permute.xlu2 %3023 }
 0x1a0   : > { %v3026_v33 = vunpack.i.h.bf16 %v3024_v45  ;;  %v3025_v52 = vunpack.i.l.bf16 %v3024_v45 }
 0x1a1   : > { %v4300_v35 = vpop.permute.xlu1 %2973 }
 0x1a2   : > { %v4303_v42 = vsel %vm1846_vm6, %v1844_v17, %v3025_v52  ;;  %v4306_v16 = vsel %vm1846_vm6, %v1845_v30, %v3026_v33 }
 0x1a3   : > { %v2984_v29 = vpop.permute.xlu0 %2983 }
 0x1a4   : > { %v2986_v58 = vunpack.i.h.bf16 %v2984_v29  ;;  %v2985_v36 = vunpack.i.l.bf16 %v2984_v29 }
 0x1a6   : > { %v4310_v15 = vsel %vm1846_vm6, %v4133_v7, %v2985_v36  ;;  %v4314_v14 = vsel %vm1846_vm6, %v4136_v51, %v2986_v58  ;;  %v1848_v58 = vsel %vm1846_vm6, %v4165_v28, %v2951_v22  ;;  %v2956_v36 = vunpack.i.h.bf16 %v4271_v63 }
 0x1a7   : > { %v3039_v4 = vpop.permute.xlu2 %3038 }
 0x1a8   : > { %v3040_v45 = vunpack.i.l.bf16 %v3039_v4 }
 0x1a9   : > { %v4316_v31 = vpop.permute.xlu1 %2988 }
 0x1ab   : > { %v2999_v10 = vpop.permute.xlu0 %2998 }
 0x1ac   : > { %v3001_v43 = vunpack.i.h.bf16 %v2999_v10  ;;  %v3000_v11 = vunpack.i.l.bf16 %v2999_v10 }
 0x1ae   : > { %v4320_v17 = vsel %vm1846_vm6, %v4154_v38, %v3000_v11  ;;  %v4324_v30 = vsel %vm1846_vm6, %v4157_v55, %v3001_v43 }
 0x1af   : > { %v3054_v48 = vpop.permute.xlu2 %3053 }
 0x1b1   : > { %v3004_v7 = vpop.permute.xlu1 %3003 }
 0x1b2   : > { %v3006_v57 = vunpack.i.h.bf16 %v3004_v7  ;;  %v3005_v3 = vunpack.i.l.bf16 %v3004_v7  ;;  %v3056_v7 = vunpack.i.h.bf16 %v3054_v48 }
 0x1b3   : > { %v3014_v32 = vpop.permute.xlu0 %3013 }
 0x1b4   : > { %v4328_v51 = vsel %vm1846_vm6, %v4233_v0, %v3005_v3  ;;  %v4332_v6 = vsel %vm1846_vm6, %v4237_v27, %v3006_v57  ;;  %v3016_v21 = vunpack.i.h.bf16 %v3014_v32  ;;  %v3015_v25 = vunpack.i.l.bf16 %v3014_v32 }
 0x1b5   : > { %v2950_v0 = vunpack.i.l.bf16 %v4198_v24  ;;  %v3041_v27 = vunpack.i.h.bf16 %v3039_v4  ;;  %v3055_v57 = vunpack.i.l.bf16 %v3054_v48 }
 0x1b6   : > { %v4336_v38 = vsel %vm1846_vm6, %v4179_v5, %v3015_v25  ;;  %v4340_v55 = vsel %vm1846_vm6, %v4182_v59, %v3016_v21 }
 0x1b7   : > { %v1847_v24 = vsel %vm1846_vm6, %v4161_v41, %v2950_v0  ;;  %v3069_v3 = vpop.permute.xlu2 %3068 }
 0x1b9   : > { %v3019_v18 = vpop.permute.xlu1 %3018 }
 0x1ba   : > { %v3021_v20 = vunpack.i.h.bf16 %v3019_v18  ;;  %v3020_v37 = vunpack.i.l.bf16 %v3019_v18 }
 0x1bb   : > { %v3029_v33 = vpop.permute.xlu0 %3028 }
 0x1bc   : > { %v4346_v5 = vsel %vm1846_vm6, %v4258_v9, %v3020_v37  ;;  %v4350_v59 = vsel %vm1846_vm6, %v4262_v44, %v3021_v20  ;;  %v3031_v52 = vunpack.i.h.bf16 %v3029_v33  ;;  %v3030_v29 = vunpack.i.l.bf16 %v3029_v33 }
 0x1bd   : > { %v2955_v9 = vunpack.i.l.bf16 %v4271_v63  ;;  %v1850_v63 = vsel %vm1846_vm6, %v4094_v56, %v2956_v36  ;;  %v2971_v37 = vunpack.i.h.bf16 %v4286_v23 }
 0x1be   : > { %v1880_v10 = vsel %vm1879_vm8, %v1847_v24, %v3030_v29  ;;  %v1881_v43 = vsel %vm1879_vm8, %v1848_v58, %v3031_v52 }
 0x1bf   : > { %v1913_v11 = vsel %vm1912_vm9, %v1880_v10, %v3040_v45  ;;  %v1914_v44 = vsel %vm1912_vm9, %v1881_v43, %v3041_v27  ;;  %v1849_v21 = vsel %vm1846_vm6, %v4091_v54, %v2955_v9  ;;  %v2970_v27 = vunpack.i.l.bf16 %v4286_v23  ;;  %v3084_v24 = vpop.permute.xlu2 %3083 }
 0x1c0   : > { %v1945_v4 = vpack.c.bf16 %v1914_v44, %v1913_v11  ;;  %v1856_v52 = vsel %vm1846_vm6, %v4115_v1, %v2971_v37  ;;  %v2991_v11 = vunpack.i.h.bf16 %v4316_v31  ;;  %v2990_v44 = vunpack.i.l.bf16 %v4316_v31 }
 0x1c1   : > { %v3034_v41 = vpop.permute.xlu1 %3033  ;;  %v1855_v56 = vsel %vm1846_vm6, %v4112_v61, %v2970_v27  ;;  %v2975_v1 = vunpack.i.l.bf16 %v4300_v35 }
 0x1c2   : > { %2420 = vmatmul.msk.bf16.vlgmr.msra.gmra.mxu0 %vm1981_vm10, %v1945_v4  ;;  %v3036_v28 = vunpack.i.h.bf16 %v3034_v41  ;;  %v3035_v32 = vunpack.i.l.bf16 %v3034_v41  ;;  %v2976_v4 = vunpack.i.h.bf16 %v4300_v35  ;;  %v1864_v31 = vsel %vm1846_vm6, %v4212_v47, %v2991_v11 }
 0x1c3   : > { %v3044_v25 = vpop.permute.xlu0 %3043 }
 0x1c4   : > { %v1882_v22 = vsel %vm1879_vm8, %v1849_v21, %v3035_v32  ;;  %v1883_v0 = vsel %vm1879_vm8, %v1850_v63, %v3036_v28  ;;  %v1863_v21 = vsel %vm1846_vm6, %v4208_v46, %v2990_v44  ;;  %v3086_v63 = vunpack.i.h.bf16 %v3084_v24 }
 0x1c5   : > { %v1915_v18 = vsel %vm1912_vm9, %v1882_v22, %v3055_v57  ;;  %v1916_v48 = vsel %vm1912_vm9, %v1883_v0, %v3056_v7  ;;  %v3071_v7 = vunpack.i.h.bf16 %v3069_v3  ;;  %v3070_v57 = vunpack.i.l.bf16 %v3069_v3 }
 0x1c6   : > { %v1946_v20 = vpack.c.bf16 %v1916_v48, %v1915_v18  ;;  %v3085_v22 = vunpack.i.l.bf16 %v3084_v24  ;;  %v1858_v37 = vsel %vm1846_vm6, %v4195_v40, %v2976_v4  ;;  %v2996_v44 = vunpack.i.h.bf16 %v4265_v34 }
 0x1c7   : > { %v3099_v47 = vpop.permute.xlu2 %3098  ;;  %v3011_v4 = vunpack.i.h.bf16 %v4280_v49 }
 0x1c9   : > { %v3049_v45 = vpop.permute.xlu1 %3048 }
 0x1ca   : > { %v3051_v33 = vunpack.i.h.bf16 %v3049_v45  ;;  %v3050_v54 = vunpack.i.l.bf16 %v3049_v45 }
 0x1cb   : > { %v3059_v29 = vpop.permute.xlu0 %3058 }
 0x1cc   : > { %v1888_v58 = vsel %vm1879_vm8, %v1855_v56, %v3050_v54  ;;  %v1889_v36 = vsel %vm1879_vm8, %v1856_v52, %v3051_v33  ;;  %v3061_v10 = vunpack.i.h.bf16 %v3059_v29  ;;  %v3060_v43 = vunpack.i.l.bf16 %v3059_v29 }
 0x1cd   : > { %v3046_v56 = vunpack.i.h.bf16 %v3044_v25  ;;  %v3045_v52 = vunpack.i.l.bf16 %v3044_v25 }
 0x1ce   : > { %v1921_v9 = vsel %vm1912_vm9, %v1888_v58, %v3060_v43  ;;  %v1922_v23 = vsel %vm1912_vm9, %v1889_v36, %v3061_v10 }
 0x1cf   : > { %v1949_v61 = vpack.c.bf16 %v1922_v23, %v1921_v9  ;;  %v1884_v10 = vsel %vm1879_vm8, %v4290_v50, %v3045_v52  ;;  %v1885_v43 = vsel %vm1879_vm8, %v4294_v19, %v3046_v56  ;;  %v3114_v50 = vpop.permute.xlu2 %3113 }
 0x1d1   : > { %2424 = vmatmul.msk.bf16.vlgmr.msra.gmra.mxu1 %vm1981_vm10, %v1949_v61  ;;  %v3064_v41 = vpop.permute.xlu1 %3063  ;;  %v2995_v61 = vunpack.i.l.bf16 %v4265_v34 }
 0x1d2   : > { %2421 = vmatmul.msk.bf16.gmra.mxu0 %vm1981_vm10, %v1946_v20  ;;  %v3066_v28 = vunpack.i.h.bf16 %v3064_v41  ;;  %v3065_v32 = vunpack.i.l.bf16 %v3064_v41  ;;  %v1857_v20 = vsel %vm1846_vm6, %v4191_v26, %v2975_v1  ;;  %v3010_v1 = vunpack.i.l.bf16 %v4280_v49 }
 0x1d3   : > { %v3074_v0 = vpop.permute.xlu0 %3073  ;;  %v3101_v41 = vunpack.i.h.bf16 %v3099_v47 }
 0x1d4   : > { %v1896_v35 = vsel %vm1879_vm8, %v1863_v21, %v3065_v32  ;;  %v1897_v3 = vsel %vm1879_vm8, %v1864_v31, %v3066_v28  ;;  %v3076_v18 = vunpack.i.h.bf16 %v3074_v0  ;;  %v3075_v48 = vunpack.i.l.bf16 %v3074_v0 }
 0x1d5   : > { %v1929_v46 = vsel %vm1912_vm9, %v1896_v35, %v3070_v57  ;;  %v1930_v27 = vsel %vm1912_vm9, %v1897_v3, %v3071_v7  ;;  %v3100_v28 = vunpack.i.l.bf16 %v3099_v47  ;;  %v1865_v32 = vsel %vm1846_vm6, %v4224_v2, %v2995_v61 }
 0x1d6   : > { %v1890_v45 = vsel %vm1879_vm8, %v1857_v20, %v3075_v48  ;;  %v1891_v33 = vsel %vm1879_vm8, %v1858_v37, %v3076_v18  ;;  %v1953_v54 = vpack.c.bf16 %v1930_v27, %v1929_v46  ;;  %v1866_v21 = vsel %vm1846_vm6, %v4228_v12, %v2996_v44 }
 0x1d7   : > { %v1923_v29 = vsel %vm1912_vm9, %v1890_v45, %v3085_v22  ;;  %v1924_v24 = vsel %vm1912_vm9, %v1891_v33, %v3086_v63  ;;  %v1871_v49 = vsel %vm1846_vm6, %v4249_v53, %v3010_v1  ;;  %v1872_v63 = vsel %vm1846_vm6, %v4253_v60, %v3011_v4  ;;  %v3129_v47 = vpop.permute.xlu2 %3128 }
 0x1d8   : > { %2428 = vmatmul.msk.bf16.vlgmr.msra.gmra.mxu2 %vm1981_vm10, %v1953_v54  ;;  %v1950_v26 = vpack.c.bf16 %v1924_v24, %v1923_v29  ;;  %v1904_v48 = vsel %vm1879_vm8, %v1871_v49, %v3100_v28  ;;  %v1905_v20 = vsel %vm1879_vm8, %v1872_v63, %v3101_v41 }
 0x1d9   : > { %v3079_v40 = vpop.permute.xlu1 %3078 }
 0x1da   : > { %v3081_v58 = vunpack.i.h.bf16 %v3079_v40  ;;  %v3080_v36 = vunpack.i.l.bf16 %v3079_v40 }
 0x1db   : > { %v3089_v9 = vpop.permute.xlu0 %3088 }
 0x1dc   : > { %v1917_v23 = vsel %vm1912_vm9, %v1884_v10, %v3080_v36  ;;  %v1918_v25 = vsel %vm1912_vm9, %v1885_v43, %v3081_v58  ;;  %v3091_v7 = vunpack.i.h.bf16 %v3089_v9  ;;  %v3090_v57 = vunpack.i.l.bf16 %v3089_v9 }
 0x1dd   : > { %v1947_v11 = vpack.c.bf16 %v1918_v25, %v1917_v23  ;;  %v3116_v58 = vunpack.i.h.bf16 %v3114_v50  ;;  %v3115_v36 = vunpack.i.l.bf16 %v3114_v50  ;;  %v3131_v43 = vunpack.i.h.bf16 %v3129_v47 }
 0x1de   : > { %v1898_v22 = vsel %vm1879_vm8, %v1865_v32, %v3090_v57  ;;  %v1899_v0 = vsel %vm1879_vm8, %v1866_v21, %v3091_v7  ;;  %v3130_v9 = vunpack.i.l.bf16 %v3129_v47 }
 0x1df   : > { %v3144_v61 = vpop.permute.xlu2 %3143  ;;  %v1901_v41 = vsel %vm1879_vm8, %v4324_v30, %v3131_v43 }
 0x1e0   : > { %v1900_v50 = vsel %vm1879_vm8, %v4320_v17, %v3130_v9  ;;  %v3146_v32 = vunpack.i.h.bf16 %v3144_v61  ;;  %v3145_v21 = vunpack.i.l.bf16 %v3144_v61 }
 0x1e1   : > { %2425 = vmatmul.msk.bf16.gmra.mxu1 %vm1981_vm10, %v1950_v26  ;;  %v3094_v19 = vpop.permute.xlu1 %3093 }
 0x1e2   : > { %2422 = vmatmul.msk.bf16.gmra.mxu0 %vm1981_vm10, %v1947_v11  ;;  %v3096_v34 = vunpack.i.h.bf16 %v3094_v19  ;;  %v3095_v31 = vunpack.i.l.bf16 %v3094_v19 }
 0x1e3   : > { %v3104_v35 = vpop.permute.xlu0 %3103 }
 0x1e4   : > { %v3106_v3 = vunpack.i.h.bf16 %v3104_v35  ;;  %v3105_v2 = vunpack.i.l.bf16 %v3104_v35  ;;  %v1931_v18 = vsel %vm1912_vm9, %v1898_v22, %v3095_v31  ;;  %v1932_v12 = vsel %vm1912_vm9, %v1899_v0, %v3096_v34 }
 0x1e5   : > { %v1954_v37 = vpack.c.bf16 %v1932_v12, %v1931_v18 }
 0x1e6   : > { %v1937_v53 = vsel %vm1912_vm9, %v1904_v48, %v3105_v2  ;;  %v1938_v60 = vsel %vm1912_vm9, %v1905_v20, %v3106_v3 }
 0x1e7   : > { %v1957_v46 = vpack.c.bf16 %v1938_v60, %v1937_v53  ;;  %v3159_v35 = vpop.permute.xlu2 %3158 }
 0x1e8   : > { %2429 = vmatmul.msk.bf16.gmra.mxu2 %vm1981_vm10, %v1954_v37  ;;  %v3161_v12 = vunpack.i.h.bf16 %v3159_v35  ;;  %v3160_v48 = vunpack.i.l.bf16 %v3159_v35 }
 0x1e9   : > { %2432 = vmatmul.msk.bf16.vlgmr.msra.gmra.mxu3 %vm1981_vm10, %v1957_v46  ;;  %v3109_v27 = vpop.permute.xlu1 %3108 }
 0x1ea   : > { %v3111_v45 = vunpack.i.h.bf16 %v3109_v27  ;;  %v3110_v33 = vunpack.i.l.bf16 %v3109_v27 }
 0x1eb   : > { %v3119_v54 = vpop.permute.xlu0 %3118 }
 0x1ec   : > { %v1886_v56 = vsel %vm1879_vm8, %v4217_v13, %v3110_v33  ;;  %v1887_v52 = vsel %vm1879_vm8, %v4220_v8, %v3111_v45  ;;  %v3121_v29 = vunpack.i.h.bf16 %v3119_v54  ;;  %v3120_v24 = vunpack.i.l.bf16 %v3119_v54 }
 0x1ed   : > { %v1892_v13 = vsel %vm1879_vm8, %v4242_v62, %v3115_v36  ;;  %v1893_v8 = vsel %vm1879_vm8, %v4245_v39, %v3116_v58  ;;  %v1902_v33 = vsel %vm1879_vm8, %v4328_v51, %v3160_v48  ;;  %v1903_v54 = vsel %vm1879_vm8, %v4332_v6, %v3161_v12 }
 0x1ee   : > { %v1919_v26 = vsel %vm1912_vm9, %v1886_v56, %v3120_v24  ;;  %v1920_v40 = vsel %vm1912_vm9, %v1887_v52, %v3121_v29 }
 0x1ef   : > { %v1948_v10 = vpack.c.bf16 %v1920_v40, %v1919_v26  ;;  %v3174_v29 = vpop.permute.xlu2 %3173 }
 0x1f0   : > { %v3176_v26 = vunpack.i.h.bf16 %v3174_v29  ;;  %v3175_v40 = vunpack.i.l.bf16 %v3174_v29 }
 0x1f1   : > { %v3124_v23 = vpop.permute.xlu1 %3123 }
 0x1f2   : > { %2423 = vmatmul.msk.bf16.gmra.mxu0 %vm1981_vm10, %v1948_v10  ;;  %v3126_v25 = vunpack.i.h.bf16 %v3124_v23  ;;  %v3125_v11 = vunpack.i.l.bf16 %v3124_v23 }
 0x1f3   : > { %v3134_v44 = vpop.permute.xlu0 %3133 }
 0x1f4   : > { %v3136_v4 = vunpack.i.h.bf16 %v3134_v44  ;;  %v3135_v1 = vunpack.i.l.bf16 %v3134_v44  ;;  %v1925_v7 = vsel %vm1912_vm9, %v1892_v13, %v3125_v11  ;;  %v1926_v57 = vsel %vm1912_vm9, %v1893_v8, %v3126_v25 }
 0x1f5   : > { %v1951_v28 = vpack.c.bf16 %v1926_v57, %v1925_v7 }
 0x1f6   : > { %v1933_v62 = vsel %vm1912_vm9, %v1900_v50, %v3135_v1  ;;  %v1934_v19 = vsel %vm1912_vm9, %v1901_v41, %v3136_v4 }
 0x1f7   : > { %2426 = vmatmul.msk.bf16.gmra.mxu1 %vm1981_vm10, %v1951_v28  ;;  %v1955_v39 = vpack.c.bf16 %v1934_v19, %v1933_v62 }
 0x1f9   : > { %2430 = vmatmul.msk.bf16.gmra.mxu2 %vm1981_vm10, %v1955_v39  ;;  %v3139_v34 = vpop.permute.xlu1 %3138 }
 0x1fa   : > { %v3141_v31 = vunpack.i.h.bf16 %v3139_v34  ;;  %v3140_v49 = vunpack.i.l.bf16 %v3139_v34 }
 0x1fb   : > { %v3149_v63 = vpop.permute.xlu0 %3148 }
 0x1fc   : > { %v1906_v17 = vsel %vm1879_vm8, %v4336_v38, %v3140_v49  ;;  %v1907_v30 = vsel %vm1879_vm8, %v4340_v55, %v3141_v31  ;;  %v3151_v2 = vunpack.i.h.bf16 %v3149_v63  ;;  %v3150_v18 = vunpack.i.l.bf16 %v3149_v63 }
 0x1fd   : > { %v1939_v22 = vsel %vm1912_vm9, %v1906_v17, %v3145_v21  ;;  %v1940_v0 = vsel %vm1912_vm9, %v1907_v30, %v3146_v32 }
 0x1fe   : > { %v1958_v3 = vpack.c.bf16 %v1940_v0, %v1939_v22  ;;  %v1894_v38 = vsel %vm1879_vm8, %v4310_v15, %v3150_v18  ;;  %v1895_v55 = vsel %vm1879_vm8, %v4314_v14, %v3151_v2 }
 0x200   : > { %2433 = vmatmul.msk.bf16.gmra.mxu3 %vm1981_vm10, %v1958_v3 }
 0x201   : > { %v3154_v20 = vpop.permute.xlu1 %3153 }
 0x202   : > { %v3156_v37 = vunpack.i.h.bf16 %v3154_v20  ;;  %v3155_v53 = vunpack.i.l.bf16 %v3154_v20 }
 0x203   : > { %v3164_v60 = vpop.permute.xlu0 %3163 }
 0x204   : > { %v3166_v46 = vunpack.i.h.bf16 %v3164_v60  ;;  %v3165_v27 = vunpack.i.l.bf16 %v3164_v60  ;;  %v1927_v47 = vsel %vm1912_vm9, %v1894_v38, %v3155_v53  ;;  %v1928_v45 = vsel %vm1912_vm9, %v1895_v55, %v3156_v37 }
 0x205   : > { %v1952_v56 = vpack.c.bf16 %v1928_v45, %v1927_v47 }
 0x206   : > { %v1935_v52 = vsel %vm1912_vm9, %v1902_v33, %v3165_v27  ;;  %v1936_v15 = vsel %vm1912_vm9, %v1903_v54, %v3166_v46 }
 0x207   : > { %2427 = vmatmul.msk.bf16.gmra.mxu1 %vm1981_vm10, %v1952_v56  ;;  %v1956_v14 = vpack.c.bf16 %v1936_v15, %v1935_v52 }
 0x209   : > { %2431 = vmatmul.msk.bf16.gmra.mxu2 %vm1981_vm10, %v1956_v14  ;;  %v3169_v24 = vpop.permute.xlu1 %3168 }
 0x20a   : > { %v3171_v58 = vunpack.i.h.bf16 %v3169_v24  ;;  %v3170_v36 = vunpack.i.l.bf16 %v3169_v24 }
 0x20b   : > { %v3179_v10 = vpop.permute.xlu0 %3178 }
 0x20c   : > { %v1908_v51 = vsel %vm1879_vm8, %v4346_v5, %v3170_v36  ;;  %v1909_v6 = vsel %vm1879_vm8, %v4350_v59, %v3171_v58  ;;  %v3181_v25 = vunpack.i.h.bf16 %v3179_v10  ;;  %v3180_v11 = vunpack.i.l.bf16 %v3179_v10 }
 0x20d   : > { %v1941_v43 = vsel %vm1912_vm9, %v1908_v51, %v3175_v40  ;;  %v1942_v9 = vsel %vm1912_vm9, %v1909_v6, %v3176_v26 }
 0x20e   : > { %v1959_v23 = vpack.c.bf16 %v1942_v9, %v1941_v43  ;;  %v1910_v61 = vsel %vm1879_vm8, %v4303_v42, %v3180_v11  ;;  %v1911_v5 = vsel %vm1879_vm8, %v4306_v16, %v3181_v25 }
 0x210   : > { %2434 = vmatmul.msk.bf16.gmra.mxu3 %vm1981_vm10, %v1959_v23 }
 0x211   : > { %v3184_v13 = vpop.permute.xlu1 %3183 }
 0x212   : > { %v3186_v8 = vunpack.i.h.bf16 %v3184_v13  ;;  %v3185_v44 = vunpack.i.l.bf16 %v3184_v13 }
 0x214   : > { %v1943_v59 = vsel %vm1912_vm9, %v1910_v61, %v3185_v44  ;;  %v1944_v4 = vsel %vm1912_vm9, %v1911_v5, %v3186_v8 }
 0x215   : > { %v1960_v1 = vpack.c.bf16 %v1944_v4, %v1943_v59 }
 0x220   : > { %2435 = vmatmul.msk.bf16.gmra.mxu3 %vm1981_vm10, %v1960_v1 }
 0x23f   : > { %v2043_v7 = vpop.f32.mrf.mxu0 }
 0x240   : > { %2232 = vxpose.xlu2.b32.start [1/16] (narrow) %v2043_v7, 8  ;;  %v2162_v31 = vmul.f32 %v2043_v7, %v2043_v7 }
 0x247   : > { %v2045_v57 = vpop.f32.mrf.mxu0 }
 0x248   : > { %2233 = vxpose.xlu2.b32.cont [2/16] (narrow) %v2045_v57, 8  ;;  %v2163_v21 = vmul.f32 %v2045_v57, %v2045_v57  ;;  %v2123_v49 = vadd.f32 %v2045_v57, %v2043_v7 }
 0x24a   : > { %v2194_v30 = vadd.f32 %v2163_v21, %v2162_v31 }
 0x24e   : > { %v4490_v50 = vpop.f32.mrf.mxu1 }
 0x24f   : > { %v2048_v41 = vpop.f32.mrf.mxu0  ;;  %v2170_v52 = vmul.f32 %v4490_v50, %v4490_v50 }
 0x250   : > { %2234 = vxpose.xlu2.b32.cont [3/16] (narrow) %v2048_v41, 8  ;;  %v2164_v63 = vmul.f32 %v2048_v41, %v2048_v41  ;;  %v2124_v22 = vadd.f32 %v2123_v49, %v2048_v41 }
 0x252   : > { %v2195_v3 = vadd.f32 %v2194_v30, %v2164_v63 }
 0x256   : > { %v4492_v42 = vpop.f32.mrf.mxu1 }
 0x257   : > { %v2050_v28 = vpop.f32.mrf.mxu0  ;;  %v2171_v24 = vmul.f32 %v4492_v42, %v4492_v42 }
 0x258   : > { %2235 = vxpose.xlu2.b32.cont [4/16] (narrow) %v2050_v28, 8  ;;  %v2165_v0 = vmul.f32 %v2050_v28, %v2050_v28  ;;  %v2125_v2 = vadd.f32 %v2124_v22, %v2050_v28 }
 0x25a   : > { %v2196_v48 = vadd.f32 %v2195_v3, %v2165_v0 }
 0x25b   : > { %v4494_v16 = vpop.f32.mrf.mxu2 }
 0x25c   : > { %2264 = vxpose.xlu0.b32.start [1/16] (narrow) %v4494_v16, 8 }
 0x25e   : > { %v4497_v19 = vpop.f32.mrf.mxu1 }
 0x25f   : > { %v2053_v62 = vpop.f32.mrf.mxu0  ;;  %v2172_v51 = vmul.f32 %v4497_v19, %v4497_v19 }
 0x260   : > { %2236 = vxpose.xlu2.b32.cont [5/16] (narrow) %v2053_v62, 8  ;;  %v2166_v18 = vmul.f32 %v2053_v62, %v2053_v62  ;;  %v2126_v20 = vadd.f32 %v2125_v2, %v2053_v62 }
 0x262   : > { %v2197_v38 = vadd.f32 %v2196_v48, %v2166_v18 }
 0x263   : > { %v4499_v39 = vpop.f32.mrf.mxu2 }
 0x264   : > { %2265 = vxpose.xlu0.b32.cont [2/16] (narrow) %v4499_v39, 8  ;;  %v2179_v63 = vmul.f32 %v4499_v39, %v4499_v39 }
 0x266   : > { %v4504_v17 = vpop.f32.mrf.mxu1 }
 0x267   : > { %v2055_v32 = vpop.f32.mrf.mxu0  ;;  %v2173_v43 = vmul.f32 %v4504_v17, %v4504_v17 }
 0x268   : > { %2237 = vxpose.xlu2.b32.cont [6/16] (narrow) %v2055_v32, 8  ;;  %v2167_v37 = vmul.f32 %v2055_v32, %v2055_v32  ;;  %v2127_v55 = vadd.f32 %v2126_v20, %v2055_v32 }
 0x26a   : > { %v2198_v27 = vadd.f32 %v2197_v38, %v2167_v37 }
 0x26b   : > { %v4502_v34 = vpop.f32.mrf.mxu2 }
 0x26c   : > { %2266 = vxpose.xlu0.b32.cont [3/16] (narrow) %v4502_v34, 8  ;;  %v4507_v12 = vpop.f32.mrf.mxu3  ;;  %v2180_v0 = vmul.f32 %v4502_v34, %v4502_v34 }
 0x26f   : > { %v2058_v35 = vpop.f32.mrf.mxu0 }
 0x270   : > { %2238 = vxpose.xlu2.b32.cont [7/16] (narrow) %v2058_v35, 8  ;;  %v2168_v60 = vmul.f32 %v2058_v35, %v2058_v35  ;;  %v2128_v47 = vadd.f32 %v2127_v55, %v2058_v35 }
 0x272   : > { %v2199_v33 = vadd.f32 %v2198_v27, %v2168_v60 }
 0x273   : > { %v4509_v53 = vpop.f32.mrf.mxu2 }
 0x274   : > { %2267 = vxpose.xlu0.b32.cont [4/16] (narrow) %v4509_v53, 8  ;;  %v4512_v46 = vpop.f32.mrf.mxu1  ;;  %v4517_v14 = vpop.f32.mrf.mxu3 }
 0x275   : > { %v2174_v11 = vmul.f32 %v4512_v46, %v4512_v46 }
 0x277   : > { %v2060_v45 = vpop.f32.mrf.mxu0 }
 0x278   : > { %v2129_v54 = vadd.f32 %v2128_v47, %v2060_v45  ;;  %v2169_v56 = vmul.f32 %v2060_v45, %v2060_v45  ;;  %2239 = vxpose.xlu2.b32.cont [8/16] (narrow) %v2060_v45, 8 }
 0x27a   : > { %v2130_v15 = vadd.f32 %v2129_v54, %v4490_v50  ;;  %v2200_v29 = vadd.f32 %v2199_v33, %v2169_v56 }
 0x27c   : > { %v2131_v26 = vadd.f32 %v2130_v15, %v4492_v42  ;;  %v2201_v40 = vadd.f32 %v2200_v29, %v2170_v52  ;;  %v2093_v58 = vpop.f32.mrf.mxu2  ;;  %v4522_v36 = vpop.f32.mrf.mxu1 }
 0x27d   : > { %2268 = vxpose.xlu0.b32.cont [5/16] (narrow) %v2093_v58, 8  ;;  %v2175_v4 = vmul.f32 %v4522_v36, %v4522_v36  ;;  %v2182_v20 = vmul.f32 %v2093_v58, %v2093_v58 }
 0x27e   : > { %v2132_v6 = vadd.f32 %v2131_v26, %v4497_v19  ;;  %v2202_v10 = vadd.f32 %v2201_v40, %v2171_v24 }
 0x280   : > { %v2203_v9 = vadd.f32 %v2202_v10, %v2172_v51  ;;  %v2133_v23 = vadd.f32 %v2132_v6, %v4504_v17  ;;  %2240 = vxpose.xlu2.b32.cont [9/16] (narrow) %v4490_v50, 8 }
 0x282   : > { %v2204_v25 = vadd.f32 %v2203_v9, %v2173_v43  ;;  %v2134_v13 = vadd.f32 %v2133_v23, %v4512_v46 }
 0x283   : > { %v4534_v8 = vpop.f32.mrf.mxu3 }
 0x284   : > { %v2095_v44 = vpop.f32.mrf.mxu2  ;;  %v4536_v61 = vpop.f32.mrf.mxu1  ;;  %v2205_v5 = vadd.f32 %v2204_v25, %v2174_v11  ;;  %v2135_v59 = vadd.f32 %v2134_v13, %v4522_v36  ;;  %v2188_v26 = vmul.f32 %v4534_v8, %v4534_v8 }
 0x285   : > { %2269 = vxpose.xlu0.b32.cont [6/16] (narrow) %v2095_v44, 8  ;;  %v2176_v7 = vmul.f32 %v4536_v61, %v4536_v61  ;;  %v2183_v38 = vmul.f32 %v2095_v44, %v2095_v44 }
 0x286   : > { %v2206_v1 = vadd.f32 %v2205_v5, %v2175_v4  ;;  %v2136_v57 = vadd.f32 %v2135_v59, %v4536_v61 }
 0x288   : > { %2241 = vxpose.xlu2.b32.cont [10/16] (narrow) %v4492_v42, 8  ;;  %v2207_v62 = vadd.f32 %v2206_v1, %v2176_v7  ;;  %v2178_v42 = vmul.f32 %v4494_v16, %v4494_v16 }
 0x28b   : > { %v4545_v50 = vpop.f32.mrf.mxu3 }
 0x28c   : > { %v2098_v41 = vpop.f32.mrf.mxu2  ;;  %v4547_v28 = vpop.f32.mrf.mxu1  ;;  %v2189_v6 = vmul.f32 %v4545_v50, %v4545_v50 }
 0x28d   : > { %2270 = vxpose.xlu0.b32.cont [7/16] (narrow) %v2098_v41, 8  ;;  %v2137_v32 = vadd.f32 %v2136_v57, %v4547_v28  ;;  %v2177_v21 = vmul.f32 %v4547_v28, %v4547_v28 }
 0x28f   : > { %v2138_v31 = vadd.f32 %v2137_v32, %v4494_v16  ;;  %v2208_v49 = vadd.f32 %v2207_v62, %v2177_v21  ;;  %v2181_v16 = vmul.f32 %v4509_v53, %v4509_v53 }
 0x290   : > { %2242 = vxpose.xlu2.b32.cont [11/16] (narrow) %v4497_v19, 8 }
 0x291   : > { %v2139_v30 = vadd.f32 %v2138_v31, %v4499_v39  ;;  %v2209_v22 = vadd.f32 %v2208_v49, %v2178_v42 }
 0x293   : > { %v2140_v35 = vadd.f32 %v2139_v30, %v4502_v34  ;;  %v2210_v3 = vadd.f32 %v2209_v22, %v2179_v63  ;;  %v4562_v2 = vpop.f32.mrf.mxu3  ;;  %v2184_v34 = vmul.f32 %v2098_v41, %v2098_v41 }
 0x294   : > { %v2100_v18 = vpop.f32.mrf.mxu2  ;;  %v2190_v43 = vmul.f32 %v4562_v2, %v4562_v2 }
 0x295   : > { %v2211_v48 = vadd.f32 %v2210_v3, %v2180_v0  ;;  %v2141_v19 = vadd.f32 %v2140_v35, %v4509_v53  ;;  %2271 = vxpose.xlu0.b32.cont [8/16] (narrow) %v2100_v18, 8  ;;  %v2185_v54 = vmul.f32 %v2100_v18, %v2100_v18  ;;  %v2186_v53 = vmul.f32 %v4507_v12, %v4507_v12 }
 0x297   : > { %v2142_v37 = vadd.f32 %v2141_v19, %v2093_v58  ;;  %v2212_v39 = vadd.f32 %v2211_v48, %v2181_v16 }
 0x298   : > { %2243 = vxpose.xlu2.b32.cont [12/16] (narrow) %v4504_v17, 8  ;;  %v2187_v17 = vmul.f32 %v4517_v14, %v4517_v14 }
 0x299   : > { %v2143_v55 = vadd.f32 %v2142_v37, %v2095_v44  ;;  %v2213_v60 = vadd.f32 %v2212_v39, %v2182_v20 }
 0x29b   : > { %v2144_v27 = vadd.f32 %v2143_v55, %v2098_v41  ;;  %v2214_v47 = vadd.f32 %v2213_v60, %v2183_v38  ;;  %v2115_v45 = vpop.f32.mrf.mxu3 }
 0x29c   : > { %v2191_v11 = vmul.f32 %v2115_v45, %v2115_v45 }
 0x29d   : > { %v2145_v33 = vadd.f32 %v2144_v27, %v2100_v18  ;;  %v2215_v56 = vadd.f32 %v2214_v47, %v2184_v34  ;;  %2272 = vxpose.xlu0.b32.cont [9/16] (narrow) %v4507_v12, 8 }
 0x29f   : > { %v2146_v52 = vadd.f32 %v2145_v33, %v4507_v12  ;;  %v2216_v15 = vadd.f32 %v2215_v56, %v2185_v54 }
 0x2a0   : > { %2244 = vxpose.xlu2.b32.cont [13/16] (narrow) %v4512_v46, 8 }
 0x2a1   : > { %v2147_v29 = vadd.f32 %v2146_v52, %v4517_v14  ;;  %v2217_v24 = vadd.f32 %v2216_v15, %v2186_v53 }
 0x2a3   : > { %v2218_v40 = vadd.f32 %v2217_v24, %v2187_v17  ;;  %v2148_v58 = vadd.f32 %v2147_v29, %v4534_v8  ;;  %v2118_v51 = vpop.f32.mrf.mxu3 }
 0x2a4   : > { %v2192_v5 = vmul.f32 %v2118_v51, %v2118_v51 }
 0x2a5   : > { %v2149_v12 = vadd.f32 %v2148_v58, %v4545_v50  ;;  %v2219_v10 = vadd.f32 %v2218_v40, %v2188_v26  ;;  %2273 = vxpose.xlu0.b32.cont [10/16] (narrow) %v4517_v14, 8 }
 0x2a7   : > { %v2150_v46 = vadd.f32 %v2149_v12, %v4562_v2  ;;  %v2220_v9 = vadd.f32 %v2219_v10, %v2189_v6 }
 0x2a8   : > { %2245 = vxpose.xlu2.b32.cont [14/16] (narrow) %v4522_v36, 8 }
 0x2a9   : > { %v2221_v23 = vadd.f32 %v2220_v9, %v2190_v43  ;;  %v2151_v25 = vadd.f32 %v2150_v46, %v2115_v45 }
 0x2ab   : > { %v2222_v13 = vadd.f32 %v2221_v23, %v2191_v11  ;;  %v2152_v44 = vadd.f32 %v2151_v25, %v2118_v51  ;;  %v2120_v59 = vpop.f32.mrf.mxu3 }
 0x2ac   : > { %v2193_v4 = vmul.f32 %v2120_v59, %v2120_v59 }
 0x2ad   : > { %v2223_v1 = vadd.f32 %v2222_v13, %v2192_v5  ;;  %v2153_v7 = vadd.f32 %v2152_v44, %v2120_v59  ;;  %2274 = vxpose.xlu0.b32.cont [11/16] (narrow) %v4534_v8, 8 }
 0x2af   : > { %v2154_v14 = vrot.slane %v2153_v7, 4  ;;  %v2224_v57 = vadd.f32 %v2223_v1, %v2193_v4 }
 0x2b0   : > { %2246 = vxpose.xlu2.b32.cont [15/16] (narrow) %v4536_v61, 8 }
 0x2b1   : > { %v2155_v41 = vadd.f32 %v2154_v14, %v2153_v7  ;;  %v2225_v36 = vrot.slane %v2224_v57, 4 }
 0x2b3   : > { %v2156_v62 = vrot.slane %v2155_v41, 2  ;;  %v2226_v32 = vadd.f32 %v2225_v36, %v2224_v57 }
 0x2b5   : > { %v2157_v21 = vadd.f32 %v2156_v62, %v2155_v41  ;;  %v2227_v42 = vrot.slane %v2226_v32, 2  ;;  %2275 = vxpose.xlu0.b32.cont [12/16] (narrow) %v4545_v50, 8 }
 0x2b7   : > { %v2158_v31 = vrot.slane %v2157_v21, 1  ;;  %v2228_v49 = vadd.f32 %v2227_v42, %v2226_v32 }
 0x2b8   : > { %2247 = vxpose.xlu2.b32.end [16/16] (narrow) %v4547_v28, 8 }
 0x2b9   : > { %v2159_v8 = vadd.f32 %v2158_v31, %v2157_v21  ;;  %v2229_v61 = vrot.slane %v2228_v49, 1 }
 0x2bb   : > { %2161 = vst.msk [vmem:[%s211_s11] sm:$0x1] %vm2160_vm11, %v2159_v8  ;;  %v2230_v63 = vadd.f32 %v2229_v61, %v2228_v49 }
 0x2bd   : > { %2231 = vst.msk [vmem:[%s214_s14] sm:$0x1] %vm2160_vm11, %v2230_v63  ;;  %2276 = vxpose.xlu0.b32.cont [13/16] (narrow) %v4562_v2, 8 }
 0x2c5   : > { %2277 = vxpose.xlu0.b32.cont [14/16] (narrow) %v2115_v45, 8 }
 0x2cd   : > { %2278 = vxpose.xlu0.b32.cont [15/16] (narrow) %v2118_v51, 8 }
 0x2d5   : > { %2279 = vxpose.xlu0.b32.end [16/16] (narrow) %v2120_v59, 8 }
 0x2d9   : > { %v2248_v50 = vpop.trf.xlu2 }
 0x2da   : > { %2296 = vst [vmem:[%s208_s20] sm:$0xff] %v2248_v50 }
 0x301   : > { %v2280_v28 = vpop.trf.xlu0 }
 0x302   : > { %2297 = vst [vmem:[%s208_s20 + $0x8] sm:$0xff] %v2280_v28 }
 0x303 PF: > { %s15_s15 = sadd.s32 1, %s3193_s15  }
 0x304   : > { %p12_p4 = scmp.ge.s32.totalorder %s15_s15, 4  }
 0x306   :  { %14 = sbr.rel (!%p12_p4) target bundleno = 1 (0x1), region = 84 }

</bundles_post_ra>
